<compile_context>
chip_gen: v7x
topology: tpu7x:2x2x1
jax: 0.10.0
libtpu: 0.0.40
codegen_flags: <defaults>
</compile_context>

<pallas_src>
import jax
import jax.numpy as jnp
from jax.experimental import pallas as pl
from jax.experimental.pallas import tpu as pltpu


def subnet_kernel(p_ref, w1_ref, b1_ref, w2_ref, b2_ref, o_ref, hpad_ref):
    # p_ref:    (1, H*W, Kp)     conv1 im2col patches for this image (Kp = 128-padded 9*Cin)
    # w1_ref:   (Kp, C1)         zero-padded conv1 weight       b1_ref: (1, C1)
    # w2_ref:   (9*C1, Cout)     conv2 weight, tap-major rows   b2_ref: (1, Cout)
    # o_ref:    (1, 1, Cout)     per-image channel softmax
    # hpad_ref: VMEM (H+2, W+2, C1) conv1 output with zero halo (fused "SAME" pad)
    _, HW, _ = p_ref.shape
    C1 = w1_ref.shape[1]
    Cout = w2_ref.shape[1]
    Hp, Wp, _ = hpad_ref.shape
    H, W = Hp - 2, Wp - 2

    # ---------------- conv1: single K-aligned MXU matmul + bias + ReLU ----------------
    h = jnp.dot(p_ref[0], w1_ref[...], preferred_element_type=jnp.float32)   # (HW, C1)
    h = jnp.maximum(h + b1_ref[...], 0.0)

    # ------ stage into zero-haloed scratch: zero only the 4 halo strips + interior ------
    hpad_ref[0:1, :, :] = jnp.zeros((1, Wp, C1), jnp.float32)
    hpad_ref[H + 1:H + 2, :, :] = jnp.zeros((1, Wp, C1), jnp.float32)
    hpad_ref[1:H + 1, 0:1, :] = jnp.zeros((H, 1, C1), jnp.float32)
    hpad_ref[1:H + 1, W + 1:W + 2, :] = jnp.zeros((H, 1, C1), jnp.float32)
    hpad_ref[1:H + 1, 1:W + 1, :] = h.reshape(H, W, C1)

    # ---- conv2: 9 accumulated dots reading shifted windows directly from the ref ----
    acc = jnp.zeros((HW, Cout), jnp.float32)
    for dy in range(3):
        for dx in range(3):
            t = dy * 3 + dx
            win = hpad_ref[dy:dy + H, dx:dx + W, :].reshape(HW, C1)
            acc = acc + jnp.dot(win, w2_ref[t * C1:(t + 1) * C1, :],
                                preferred_element_type=jnp.float32)
    y = jnp.maximum(acc + b2_ref[...], 0.0)                                   # (HW, Cout)

    # ---------------- AdaptiveAvgPool2d(1) + softmax over channels -------------------
    pooled = jnp.sum(y, axis=0, keepdims=True) * (1.0 / (H * W))              # (1, Cout)
    m = jnp.max(pooled, axis=1, keepdims=True)
    e = jnp.exp(pooled - m)
    denom = jnp.sum(e, axis=1, keepdims=True)
    # exact reciprocal: approx EUP path (~1e-3 rel error) would exceed the 1e-4 tolerance
    out = e * pl.reciprocal(denom, approx=False)
    o_ref[...] = out.reshape(1, 1, Cout).astype(o_ref.dtype)


def subnet_pallas(patches, w1p, b1, w2r, b2, *, H, W):
    """patches: (N, H*W, Kp) conv1 im2col (K padded to 128); returns (N, 1, Cout)."""
    N, HW, Kp = patches.shape
    C1 = w1p.shape[1]
    Cout = w2r.shape[1]
    return pl.pallas_call(
        subnet_kernel,
        out_shape=jax.ShapeDtypeStruct((N, 1, Cout), jnp.float32),
        grid_spec=pltpu.PrefetchScalarGridSpec(
            num_scalar_prefetch=0,
            grid=(N,),                                   # one image per grid step
            in_specs=[
                pl.BlockSpec((1, HW, Kp), lambda n: (n, 0, 0)),
                pl.BlockSpec((Kp, C1), lambda n: (0, 0)),
                pl.BlockSpec((1, C1), lambda n: (0, 0)),
                pl.BlockSpec((9 * C1, Cout), lambda n: (0, 0)),
                pl.BlockSpec((1, Cout), lambda n: (0, 0)),
            ],
            out_specs=pl.BlockSpec((1, 1, Cout), lambda n: (n, 0, 0)),
            scratch_shapes=[
                pltpu.VMEM((H + 2, W + 2, C1), jnp.float32),   # haloed conv1 output
            ],
        ),
        # "parallel": shards images across both TensorCores on v7x, neutral on v5e/v6e.
        # Per-step VMEM footprint is ~0.2 MiB, well under the 16 MiB v5e scoped default,
        # so no explicit vmem_limit_bytes is needed at these sizes.
        compiler_params=pltpu.CompilerParams(dimension_semantics=("parallel",)),
    )(patches, w1p, b1, w2r, b2)


def init_params(key, input_dim, output_dim):
    """Deterministic synthetic params; conv weights stored as (kh, kw, Cin, Cout)."""
    k1, k2, k3, k4 = jax.random.split(key, 4)
    fan1 = input_dim * 9
    fan2 = 32 * 9
    w1 = jax.random.uniform(k1, (3, 3, input_dim, 32), jnp.float32,
                            -1.0 / jnp.sqrt(fan1), 1.0 / jnp.sqrt(fan1))
    b1 = jax.random.uniform(k2, (32,), jnp.float32,
                            -1.0 / jnp.sqrt(fan1), 1.0 / jnp.sqrt(fan1))
    w2 = jax.random.uniform(k3, (3, 3, 32, output_dim), jnp.float32,
                            -1.0 / jnp.sqrt(fan2), 1.0 / jnp.sqrt(fan2))
    b2 = jax.random.uniform(k4, (output_dim,), jnp.float32,
                            -1.0 / jnp.sqrt(fan2), 1.0 / jnp.sqrt(fan2))
    return w1, b1, w2, b2


def subnet_forward(x_nchw, params):
    """Mirrors Subnet.forward. x_nchw: (N, Cin, H, W). Returns (N, Cout, 1, 1)."""
    w1, b1, w2, b2 = params
    N, Cin, H, W = x_nchw.shape
    C1 = w1.shape[3]
    Cout = w2.shape[3]

    # Wrapper-side conv1 im2col (tiny HBM cost, deletes the kernel's 4-lane shuffle work):
    # build (N, H*W, 9*Cin) patches and zero-pad K up to a 128-lane multiple.
    x_nhwc = jnp.transpose(x_nchw, (0, 2, 3, 1))
    xp = jnp.pad(x_nhwc, ((0, 0), (1, 1), (1, 1), (0, 0)))
    taps = [xp[:, dy:dy + H, dx:dx + W, :] for dy in range(3) for dx in range(3)]
    patches = jnp.concatenate(taps, axis=-1).reshape(N, H * W, 9 * Cin)
    K = 9 * Cin
    Kp = ((K + 127) // 128) * 128
    patches = jnp.pad(patches, ((0, 0), (0, 0), (0, Kp - K)))

    # Weights pre-reshaped once in XLA to lane-dense 2-D (no in-kernel 4-D reshapes).
    w1p = jnp.pad(w1.reshape(K, C1), ((0, Kp - K), (0, 0)))   # (Kp, C1)
    w2r = w2.reshape(9 * C1, Cout)                            # (9*C1, Cout), tap-major rows

    out = subnet_pallas(patches, w1p, b1.reshape(1, C1), w2r, b2.reshape(1, Cout),
                        H=H, W=W)                             # (N, 1, Cout)
    return out.reshape(N, Cout, 1, 1)                         # NCHW (N, Cout, 1, 1)


def subnet_reference(x_nchw, params):
    """Pure-JAX reference for correctness checking."""
    w1, b1, w2, b2 = params
    dn = jax.lax.conv_dimension_numbers(x_nchw.shape, (3, 3, 1, 1), ("NCHW", "HWIO", "NCHW"))
    h = jax.lax.conv_general_dilated(x_nchw, w1, (1, 1), "SAME", dimension_numbers=dn)
    h = jax.nn.relu(h + b1[None, :, None, None])
    y = jax.lax.conv_general_dilated(h, w2, (1, 1), "SAME", dimension_numbers=dn)
    y = jax.nn.relu(y + b2[None, :, None, None])
    y = jnp.mean(y, axis=(2, 3), keepdims=True)               # AdaptiveAvgPool2d(1)
    return jax.nn.softmax(y, axis=1)


if __name__ == "__main__":
    key = jax.random.PRNGKey(0)
    kx, kp = jax.random.split(key)

    N, Cin, H, W = 2, 4, 16, 16
    Cout = 8
    x = jax.random.normal(kx, (N, Cin, H, W), jnp.float32)
    params = init_params(kp, Cin, Cout)

    out = subnet_forward(x, params)
    out = jax.block_until_ready(out)

    ref = subnet_reference(x, params)
    assert out.shape == (N, Cout, 1, 1), out.shape
    assert jnp.allclose(out, ref, atol=1e-4, rtol=1e-4), float(jnp.max(jnp.abs(out - ref)))

    print("KERNEL_OK")
</pallas_src>

<mosaic_0001>
module attributes {stable_mosaic.version = 11 : i64} {
  func.func @subnet_kernel(%arg0: i32, %arg1: memref<1x256x128xf32, #tpu.memory_space<vmem>>, %arg2: memref<128x32xf32, #tpu.memory_space<vmem>>, %arg3: memref<1x32xf32, #tpu.memory_space<vmem>>, %arg4: memref<288x8xf32, #tpu.memory_space<vmem>>, %arg5: memref<1x8xf32, #tpu.memory_space<vmem>>, %arg6: memref<1x1x8xf32, #tpu.memory_space<vmem>>, %arg7: memref<18x18x32xf32, #tpu.memory_space<vmem>>) attributes {dimension_semantics = [#tpu.dimension_semantics<parallel>], iteration_bounds = array<i64: 2>, scalar_prefetch = 0 : i64, scratch_operands = 1 : i64, tpu.core_type = #tpu.core_type<tc>, window_params = [{transform_indices = @transform_0, window_bounds = array<i64: 1, 256, 128>}, {pipeline_mode = #tpu.pipeline_mode<synchronous>, transform_indices = @transform_1, window_bounds = array<i64: 128, 32>}, {pipeline_mode = #tpu.pipeline_mode<synchronous>, transform_indices = @transform_2, window_bounds = array<i64: 1, 32>}, {pipeline_mode = #tpu.pipeline_mode<synchronous>, transform_indices = @transform_3, window_bounds = array<i64: 288, 8>}, {pipeline_mode = #tpu.pipeline_mode<synchronous>, transform_indices = @transform_4, window_bounds = array<i64: 1, 8>}, {transform_indices = @transform_5, window_bounds = array<i64: 1, 1, 8>}]} {
    %c0 = arith.constant 0 : index
    %c0_0 = arith.constant 0 : index
    %c0_1 = arith.constant 0 : index
    %0 = vector.load %arg1[%c0, %c0_0, %c0_1] : memref<1x256x128xf32, #tpu.memory_space<vmem>>, vector<1x256x128xf32>
    %1 = vector.shape_cast %0 : vector<1x256x128xf32> to vector<256x128xf32>
    %c0_2 = arith.constant 0 : index
    %c0_3 = arith.constant 0 : index
    %2 = vector.load %arg2[%c0_2, %c0_3] : memref<128x32xf32, #tpu.memory_space<vmem>>, vector<128x32xf32>
    %cst = arith.constant dense<0.000000e+00> : vector<256x32xf32>
    %3 = tpu.matmul %1, %2, %cst {dimension_numbers = #tpu.dot_dimension_numbers<[1], [0], [0], [1], [0, 0, 1, 1], [], []>} : vector<256x128xf32>, vector<128x32xf32>, vector<256x32xf32> -> vector<256x32xf32>
    %c0_4 = arith.constant 0 : index
    %c0_5 = arith.constant 0 : index
    %4 = vector.load %arg3[%c0_4, %c0_5] : memref<1x32xf32, #tpu.memory_space<vmem>>, vector<1x32xf32>
    %5 = vector.broadcast %4 : vector<1x32xf32> to vector<256x32xf32>
    %6 = arith.addf %3, %5 : vector<256x32xf32>
    %cst_6 = arith.constant 0.000000e+00 : f32
    %7 = vector.broadcast %cst_6 : f32 to vector<256x32xf32>
    %8 = arith.maximumf %6, %7 : vector<256x32xf32>
    %cst_7 = arith.constant 0.000000e+00 : f32
    %9 = vector.broadcast %cst_7 : f32 to vector<1x18x32xf32>
    %c0_8 = arith.constant 0 : index
    %c0_9 = arith.constant 0 : index
    %c0_10 = arith.constant 0 : index
    %10 = vector.load %arg7[%c0_8, %c0_9, %c0_10] : memref<18x18x32xf32, #tpu.memory_space<vmem>>, vector<1x18x32xf32>
    tpu.vector_store %arg7[%c0_8, %c0_9, %c0_10], %9 {strides = array<i32>} : memref<18x18x32xf32, #tpu.memory_space<vmem>>, vector<1x18x32xf32>,
    %cst_11 = arith.constant 0.000000e+00 : f32
    %11 = vector.broadcast %cst_11 : f32 to vector<1x18x32xf32>
    %c17 = arith.constant 17 : index
    %c0_12 = arith.constant 0 : index
    %c0_13 = arith.constant 0 : index
    %12 = vector.load %arg7[%c17, %c0_12, %c0_13] : memref<18x18x32xf32, #tpu.memory_space<vmem>>, vector<1x18x32xf32>
    tpu.vector_store %arg7[%c17, %c0_12, %c0_13], %11 {strides = array<i32>} : memref<18x18x32xf32, #tpu.memory_space<vmem>>, vector<1x18x32xf32>,
    %cst_14 = arith.constant 0.000000e+00 : f32
    %13 = vector.broadcast %cst_14 : f32 to vector<16x1x32xf32>
    %c1 = arith.constant 1 : index
    %c0_15 = arith.constant 0 : index
    %c0_16 = arith.constant 0 : index
    %14 = vector.load %arg7[%c1, %c0_15, %c0_16] : memref<18x18x32xf32, #tpu.memory_space<vmem>>, vector<16x1x32xf32>
    tpu.vector_store %arg7[%c1, %c0_15, %c0_16], %13 {strides = array<i32>} : memref<18x18x32xf32, #tpu.memory_space<vmem>>, vector<16x1x32xf32>,
    %cst_17 = arith.constant 0.000000e+00 : f32
    %15 = vector.broadcast %cst_17 : f32 to vector<16x1x32xf32>
    %c1_18 = arith.constant 1 : index
    %c17_19 = arith.constant 17 : index
    %c0_20 = arith.constant 0 : index
    %16 = vector.load %arg7[%c1_18, %c17_19, %c0_20] : memref<18x18x32xf32, #tpu.memory_space<vmem>>, vector<16x1x32xf32>
    tpu.vector_store %arg7[%c1_18, %c17_19, %c0_20], %15 {strides = array<i32>} : memref<18x18x32xf32, #tpu.memory_space<vmem>>, vector<16x1x32xf32>,
    %17 = vector.shape_cast %8 : vector<256x32xf32> to vector<16x16x32xf32>
    %c1_21 = arith.constant 1 : index
    %c1_22 = arith.constant 1 : index
    %c0_23 = arith.constant 0 : index
    %18 = vector.load %arg7[%c1_21, %c1_22, %c0_23] : memref<18x18x32xf32, #tpu.memory_space<vmem>>, vector<16x16x32xf32>
    tpu.vector_store %arg7[%c1_21, %c1_22, %c0_23], %17 {strides = array<i32>} : memref<18x18x32xf32, #tpu.memory_space<vmem>>, vector<16x16x32xf32>,
    %cst_24 = arith.constant 0.000000e+00 : f32
    %19 = vector.broadcast %cst_24 : f32 to vector<256x8xf32>
    %c0_25 = arith.constant 0 : index
    %c0_26 = arith.constant 0 : index
    %c0_27 = arith.constant 0 : index
    %20 = vector.load %arg7[%c0_25, %c0_26, %c0_27] : memref<18x18x32xf32, #tpu.memory_space<vmem>>, vector<16x16x32xf32>
    %21 = vector.shape_cast %20 : vector<16x16x32xf32> to vector<256x32xf32>
    %c0_28 = arith.constant 0 : index
    %c0_29 = arith.constant 0 : index
    %22 = vector.load %arg4[%c0_28, %c0_29] : memref<288x8xf32, #tpu.memory_space<vmem>>, vector<32x8xf32>
    %cst_30 = arith.constant dense<0.000000e+00> : vector<256x8xf32>
    %23 = tpu.matmul %21, %22, %cst_30 {dimension_numbers = #tpu.dot_dimension_numbers<[1], [0], [0], [1], [0, 0, 1, 1], [], []>} : vector<256x32xf32>, vector<32x8xf32>, vector<256x8xf32> -> vector<256x8xf32>
    %24 = arith.addf %19, %23 : vector<256x8xf32>
    %c0_31 = arith.constant 0 : index
    %c1_32 = arith.constant 1 : index
    %c0_33 = arith.constant 0 : index
    %25 = vector.load %arg7[%c0_31, %c1_32, %c0_33] : memref<18x18x32xf32, #tpu.memory_space<vmem>>, vector<16x16x32xf32>
    %26 = vector.shape_cast %25 : vector<16x16x32xf32> to vector<256x32xf32>
    %c32 = arith.constant 32 : index
    %c0_34 = arith.constant 0 : index
    %27 = vector.load %arg4[%c32, %c0_34] : memref<288x8xf32, #tpu.memory_space<vmem>>, vector<32x8xf32>
    %cst_35 = arith.constant dense<0.000000e+00> : vector<256x8xf32>
    %28 = tpu.matmul %26, %27, %cst_35 {dimension_numbers = #tpu.dot_dimension_numbers<[1], [0], [0], [1], [0, 0, 1, 1], [], []>} : vector<256x32xf32>, vector<32x8xf32>, vector<256x8xf32> -> vector<256x8xf32>
    %29 = arith.addf %24, %28 : vector<256x8xf32>
    %c0_36 = arith.constant 0 : index
    %c2 = arith.constant 2 : index
    %c0_37 = arith.constant 0 : index
    %30 = vector.load %arg7[%c0_36, %c2, %c0_37] : memref<18x18x32xf32, #tpu.memory_space<vmem>>, vector<16x16x32xf32>
    %31 = vector.shape_cast %30 : vector<16x16x32xf32> to vector<256x32xf32>
    %c64 = arith.constant 64 : index
    %c0_38 = arith.constant 0 : index
    %32 = vector.load %arg4[%c64, %c0_38] : memref<288x8xf32, #tpu.memory_space<vmem>>, vector<32x8xf32>
    %cst_39 = arith.constant dense<0.000000e+00> : vector<256x8xf32>
    %33 = tpu.matmul %31, %32, %cst_39 {dimension_numbers = #tpu.dot_dimension_numbers<[1], [0], [0], [1], [0, 0, 1, 1], [], []>} : vector<256x32xf32>, vector<32x8xf32>, vector<256x8xf32> -> vector<256x8xf32>
    %34 = arith.addf %29, %33 : vector<256x8xf32>
    %c1_40 = arith.constant 1 : index
    %c0_41 = arith.constant 0 : index
    %c0_42 = arith.constant 0 : index
    %35 = vector.load %arg7[%c1_40, %c0_41, %c0_42] : memref<18x18x32xf32, #tpu.memory_space<vmem>>, vector<16x16x32xf32>
    %36 = vector.shape_cast %35 : vector<16x16x32xf32> to vector<256x32xf32>
    %c96 = arith.constant 96 : index
    %c0_43 = arith.constant 0 : index
    %37 = vector.load %arg4[%c96, %c0_43] : memref<288x8xf32, #tpu.memory_space<vmem>>, vector<32x8xf32>
    %cst_44 = arith.constant dense<0.000000e+00> : vector<256x8xf32>
    %38 = tpu.matmul %36, %37, %cst_44 {dimension_numbers = #tpu.dot_dimension_numbers<[1], [0], [0], [1], [0, 0, 1, 1], [], []>} : vector<256x32xf32>, vector<32x8xf32>, vector<256x8xf32> -> vector<256x8xf32>
    %39 = arith.addf %34, %38 : vector<256x8xf32>
    %c1_45 = arith.constant 1 : index
    %c1_46 = arith.constant 1 : index
    %c0_47 = arith.constant 0 : index
    %40 = vector.load %arg7[%c1_45, %c1_46, %c0_47] : memref<18x18x32xf32, #tpu.memory_space<vmem>>, vector<16x16x32xf32>
    %41 = vector.shape_cast %40 : vector<16x16x32xf32> to vector<256x32xf32>
    %c128 = arith.constant 128 : index
    %c0_48 = arith.constant 0 : index
    %42 = vector.load %arg4[%c128, %c0_48] : memref<288x8xf32, #tpu.memory_space<vmem>>, vector<32x8xf32>
    %cst_49 = arith.constant dense<0.000000e+00> : vector<256x8xf32>
    %43 = tpu.matmul %41, %42, %cst_49 {dimension_numbers = #tpu.dot_dimension_numbers<[1], [0], [0], [1], [0, 0, 1, 1], [], []>} : vector<256x32xf32>, vector<32x8xf32>, vector<256x8xf32> -> vector<256x8xf32>
    %44 = arith.addf %39, %43 : vector<256x8xf32>
    %c1_50 = arith.constant 1 : index
    %c2_51 = arith.constant 2 : index
    %c0_52 = arith.constant 0 : index
    %45 = vector.load %arg7[%c1_50, %c2_51, %c0_52] : memref<18x18x32xf32, #tpu.memory_space<vmem>>, vector<16x16x32xf32>
    %46 = vector.shape_cast %45 : vector<16x16x32xf32> to vector<256x32xf32>
    %c160 = arith.constant 160 : index
    %c0_53 = arith.constant 0 : index
    %47 = vector.load %arg4[%c160, %c0_53] : memref<288x8xf32, #tpu.memory_space<vmem>>, vector<32x8xf32>
    %cst_54 = arith.constant dense<0.000000e+00> : vector<256x8xf32>
    %48 = tpu.matmul %46, %47, %cst_54 {dimension_numbers = #tpu.dot_dimension_numbers<[1], [0], [0], [1], [0, 0, 1, 1], [], []>} : vector<256x32xf32>, vector<32x8xf32>, vector<256x8xf32> -> vector<256x8xf32>
    %49 = arith.addf %44, %48 : vector<256x8xf32>
    %c2_55 = arith.constant 2 : index
    %c0_56 = arith.constant 0 : index
    %c0_57 = arith.constant 0 : index
    %50 = vector.load %arg7[%c2_55, %c0_56, %c0_57] : memref<18x18x32xf32, #tpu.memory_space<vmem>>, vector<16x16x32xf32>
    %51 = vector.shape_cast %50 : vector<16x16x32xf32> to vector<256x32xf32>
    %c192 = arith.constant 192 : index
    %c0_58 = arith.constant 0 : index
    %52 = vector.load %arg4[%c192, %c0_58] : memref<288x8xf32, #tpu.memory_space<vmem>>, vector<32x8xf32>
    %cst_59 = arith.constant dense<0.000000e+00> : vector<256x8xf32>
    %53 = tpu.matmul %51, %52, %cst_59 {dimension_numbers = #tpu.dot_dimension_numbers<[1], [0], [0], [1], [0, 0, 1, 1], [], []>} : vector<256x32xf32>, vector<32x8xf32>, vector<256x8xf32> -> vector<256x8xf32>
    %54 = arith.addf %49, %53 : vector<256x8xf32>
    %c2_60 = arith.constant 2 : index
    %c1_61 = arith.constant 1 : index
    %c0_62 = arith.constant 0 : index
    %55 = vector.load %arg7[%c2_60, %c1_61, %c0_62] : memref<18x18x32xf32, #tpu.memory_space<vmem>>, vector<16x16x32xf32>
    %56 = vector.shape_cast %55 : vector<16x16x32xf32> to vector<256x32xf32>
    %c224 = arith.constant 224 : index
    %c0_63 = arith.constant 0 : index
    %57 = vector.load %arg4[%c224, %c0_63] : memref<288x8xf32, #tpu.memory_space<vmem>>, vector<32x8xf32>
    %cst_64 = arith.constant dense<0.000000e+00> : vector<256x8xf32>
    %58 = tpu.matmul %56, %57, %cst_64 {dimension_numbers = #tpu.dot_dimension_numbers<[1], [0], [0], [1], [0, 0, 1, 1], [], []>} : vector<256x32xf32>, vector<32x8xf32>, vector<256x8xf32> -> vector<256x8xf32>
    %59 = arith.addf %54, %58 : vector<256x8xf32>
    %c2_65 = arith.constant 2 : index
    %c2_66 = arith.constant 2 : index
    %c0_67 = arith.constant 0 : index
    %60 = vector.load %arg7[%c2_65, %c2_66, %c0_67] : memref<18x18x32xf32, #tpu.memory_space<vmem>>, vector<16x16x32xf32>
    %61 = vector.shape_cast %60 : vector<16x16x32xf32> to vector<256x32xf32>
    %c256 = arith.constant 256 : index
    %c0_68 = arith.constant 0 : index
    %62 = vector.load %arg4[%c256, %c0_68] : memref<288x8xf32, #tpu.memory_space<vmem>>, vector<32x8xf32>
    %cst_69 = arith.constant dense<0.000000e+00> : vector<256x8xf32>
    %63 = tpu.matmul %61, %62, %cst_69 {dimension_numbers = #tpu.dot_dimension_numbers<[1], [0], [0], [1], [0, 0, 1, 1], [], []>} : vector<256x32xf32>, vector<32x8xf32>, vector<256x8xf32> -> vector<256x8xf32>
    %64 = arith.addf %59, %63 : vector<256x8xf32>
    %c0_70 = arith.constant 0 : index
    %c0_71 = arith.constant 0 : index
    %65 = vector.load %arg5[%c0_70, %c0_71] : memref<1x8xf32, #tpu.memory_space<vmem>>, vector<1x8xf32>
    %66 = vector.broadcast %65 : vector<1x8xf32> to vector<256x8xf32>
    %67 = arith.addf %64, %66 : vector<256x8xf32>
    %cst_72 = arith.constant 0.000000e+00 : f32
    %68 = vector.broadcast %cst_72 : f32 to vector<256x8xf32>
    %69 = arith.maximumf %67, %68 : vector<256x8xf32>
    %cst_73 = arith.constant dense<0.000000e+00> : vector<8xf32>
    %70 = vector.multi_reduction <add>, %69, %cst_73 [0] : vector<256x8xf32> to vector<8xf32>
    %71 = vector.shape_cast %70 : vector<8xf32> to vector<1x8xf32>
    %cst_74 = arith.constant 3.906250e-03 : f32
    %72 = vector.broadcast %cst_74 : f32 to vector<1x8xf32>
    %73 = arith.mulf %71, %72 : vector<1x8xf32>
    %cst_75 = arith.constant dense<0xFF800000> : vector<1xf32>
    %74 = vector.multi_reduction <maximumf>, %73, %cst_75 [1] : vector<1x8xf32> to vector<1xf32>
    %75 = vector.shape_cast %74 : vector<1xf32> to vector<1x1xf32>
    %76 = vector.broadcast %75 : vector<1x1xf32> to vector<1x8xf32>
    %77 = arith.subf %73, %76 : vector<1x8xf32>
    %78 = math.exp %77 : vector<1x8xf32>
    %cst_76 = arith.constant dense<0.000000e+00> : vector<1xf32>
    %79 = vector.multi_reduction <add>, %78, %cst_76 [1] : vector<1x8xf32> to vector<1xf32>
    %80 = vector.shape_cast %79 : vector<1xf32> to vector<1x1xf32>
    %81 = tpu.reciprocal %80 : vector<1x1xf32> -> vector<1x1xf32>
    %82 = vector.broadcast %81 : vector<1x1xf32> to vector<1x8xf32>
    %83 = arith.mulf %78, %82 : vector<1x8xf32>
    %84 = vector.shape_cast %83 : vector<1x8xf32> to vector<1x1x8xf32>
    %c0_77 = arith.constant 0 : index
    %c0_78 = arith.constant 0 : index
    %c0_79 = arith.constant 0 : index
    %85 = vector.load %arg6[%c0_77, %c0_78, %c0_79] : memref<1x1x8xf32, #tpu.memory_space<vmem>>, vector<1x1x8xf32>
    tpu.vector_store %arg6[%c0_77, %c0_78, %c0_79], %84 {strides = array<i32>} : memref<1x1x8xf32, #tpu.memory_space<vmem>>, vector<1x1x8xf32>,
    return
  }
  func.func @transform_0(%arg0: i32) -> (i32, i32, i32) {
    %c0_i32 = arith.constant 0 : i32
    %c0_i32_0 = arith.constant 0 : i32
    %c0_i32_1 = arith.constant 0 : i32
    return %arg0, %c0_i32, %c0_i32_0 : i32, i32, i32
  }
  func.func @transform_1(%arg0: i32) -> (i32, i32) {
    %c0_i32 = arith.constant 0 : i32
    %c0_i32_0 = arith.constant 0 : i32
    %c0_i32_1 = arith.constant 0 : i32
    return %c0_i32, %c0_i32_0 : i32, i32
  }
  func.func @transform_2(%arg0: i32) -> (i32, i32) {
    %c0_i32 = arith.constant 0 : i32
    %c0_i32_0 = arith.constant 0 : i32
    %c0_i32_1 = arith.constant 0 : i32
    return %c0_i32, %c0_i32_0 : i32, i32
  }
  func.func @transform_3(%arg0: i32) -> (i32, i32) {
    %c0_i32 = arith.constant 0 : i32
    %c0_i32_0 = arith.constant 0 : i32
    %c0_i32_1 = arith.constant 0 : i32
    return %c0_i32, %c0_i32_0 : i32, i32
  }
  func.func @transform_4(%arg0: i32) -> (i32, i32) {
    %c0_i32 = arith.constant 0 : i32
    %c0_i32_0 = arith.constant 0 : i32
    %c0_i32_1 = arith.constant 0 : i32
    return %c0_i32, %c0_i32_0 : i32, i32
  }
  func.func @transform_5(%arg0: i32) -> (i32, i32, i32) {
    %c0_i32 = arith.constant 0 : i32
    %c0_i32_0 = arith.constant 0 : i32
    %c0_i32_1 = arith.constant 0 : i32
    return %arg0, %c0_i32, %c0_i32_0 : i32, i32, i32
  }
}

</mosaic_0001>

<bundles_post_ra>
// kernel: tpu_custom_call.1
= control target key start
LH: loop header
LB: loop body
LE: loop exit
PB: predicated region body
PF: predicated region fallthrough
CT: control target
= control target key end

     0   :  { %10 = vsyncpa [#allocation4], 0  ;;  %s7456_s0 = inlined_call_operand.hbm [shape: f32[2,256,128], index: 0, kind: input, shape index: {}]   ;;  %s7457_s1 = inlined_call_operand.vmem [shape: f32[128,32], index: 1, kind: input, shape index: {}]   ;;  %s7458_s2 = inlined_call_operand.vmem [shape: f32[1,32], index: 2, kind: input, shape index: {}]   ;;  %s7459_s3 = inlined_call_operand.vmem [shape: f32[288,8], index: 3, kind: input, shape index: {}]   ;;  %s7460_s4 = inlined_call_operand.vmem [shape: f32[1,8], index: 4, kind: input, shape index: {}]   ;;  %s7461_s5 = inlined_call_operand.hbm [shape: f32[2,1,8], index: 5, kind: output, shape index: {}]  }
   0x1   :  { %12 = vsyncpa [#allocation4 + $0x1], 0 }
   0x2   :  { %13 = vsyncpa [#allocation5], 0 }
   0x3   :  { %15 = vsyncpa [#allocation5 + $0x1], 0  ;;  %s6109_s18 = smov 0   ;;  %s6111_s19 = smov 0  }
   0x4   :  { %s6113_s20 = smov 0   ;;  %s6115_s21 = smov 0  }
   0x5 LB: > { %s6130_s22 = sadd.s32 4294967295, %s6072_s21   ;;  %s4301_s23 = sadd.s32 4294967294, %s6072_s21   ;;  %s6072_s21 = sphi %s6115_s21, %s7495_s21   ;;  %s6068_s20 = sphi %s6113_s20, %s7494_s20   ;;  %s6064_s19 = sphi %s6111_s19, %s7493_s19   ;;  %s6060_s18 = sphi %s6109_s18, %s7492_s18  }
   0x6   : > { %s6134_s24 = sadd.s32 1, %s6072_s21   ;;  %s28_s25 = sadd.s32 1, %s6068_s20 }
   0x7   : > { %s25_s26 = ssub.s32 %s6072_s21, %s6134_s24  ;;  %p35_p0 = scmp.ne.s32.totalorder %s6068_s20, %s6064_s19 }
   0x8   : > { %p26_p1 = scmp.eq.s32.totalorder %s25_s26, 0  ;;  %p36_p2 = scmp.eq.s32.totalorder %s6072_s21, 0 }
   0x9   : > { %p41_p3 = scmp.ne.s32.totalorder %s6064_s19, %s6060_s18  ;;  %p42_p4 = scmp.eq.s32.totalorder %s6130_s22, 0 }
   0xa   : > { %s6146_s27 = scalar_select %p26_p1, %s6068_s20, %s28_s25  }
   0xb   : > { %p6148_p5 = por %p36_p2, %p35_p0  ;;  %p6152_p6 = por %p42_p4, %p41_p3 }
   0xc   : > { %p149_p7 = scmp.eq.s32.totalorder %s6130_s22, 1  ;;  %p155_p8 = scmp.eq.s32.totalorder %s4301_s23, 1 }
   0xd   : > { %p5935_p10 = scmp.lt.s32.totalorder %s6072_s21, 2  ;;  %s187_s7 = sand.u32 1, %s6068_s20  }
   0xe   : > { %p6159_p11 = por %p149_p7, %p35_p0  ;;  %p6163_p12 = por %p155_p8, %p41_p3 }
   0xf   : > { %s4602_s8 = sshll.u32 %s6072_s21, 12  ;;  %s4304_s9 = sshll.u32 %s187_s7, 8 }
  0x10   : > { %s7472_s30 = scalar_select %p6159_p11, 1, 0 }
  0x11   : > { %s7473_s6 = scalar_select %p6163_p12, 1, 0 }
  0x12   : > { %s6172_s12 = scalar_lea.hbm %s7456_s0, %s4602_s8  ;;  %s191_s13 = scalar_lea.vmem [#allocation3], %s4304_s9 }
  0x13   : > { %s198_s14 = sshll.u32 %s191_s13, 4  ;;  %p6176_p13 = pnand %p5935_p10, %p6148_p5  ;;  %s6180_s14 = int_to_ptr.vmem [resolvable:$true] %s198_s14 }
  0x14   : > { %s6182_s16 = scalar_lea.sflag [#allocation4], %s187_s7  ;;  %s5976_s17 = scalar_lea.hbm %s6172_s12, 4096 }
  0x15   : > { %p5977_p0 = scmp.ne.s32.totalorder %s6172_s12, %s5976_s17  ;;  %p5978_p1 = pneg %p6176_p13 }
  0x16   : > { %s5981_s26 = scalar_lea.hbm %s7456_s0, 8192  ;;  %p5982_p4 = scmp.lt.u32.totalorder %s6172_s12, %s7456_s0 }
  0x17   : > { %p5979_p2 = pnand %p5978_p1, %p5977_p0  ;;  %p5983_p5 = scmp.lt.u32.totalorder %s5981_s26, %s5976_s17 }
  0x18   : > { %p5985_p8 = scmp.lt.u32.totalorder %s5976_s17, %s6172_s12 }
  0x19   : > { %p5980_p3 = pneg %p5979_p2  ;;  %p5984_p7 = por %p5983_p5, %p5982_p4 }
  0x1b   : > { %p5986_p10 = por %p5985_p8, %p5984_p7 }
  0x1d   : > { %p5987_p9 = pnand %p5986_p10, %p5980_p3 }
  0x1f   : > { %5990 = shalt.err (!%p5987_p9)
}
  0x20   : > { %s5991_s7 = scalar_lea.vmem %s6180_s14, 4096  ;;  %s6074_s9 = smov [#allocation3]  }
  0x21   : > { %p5992_p0 = scmp.ne.s32.totalorder %s6180_s14, %s5991_s7  ;;  %s5996_s10 = sshll.u32 %s6074_s9, 4  ;;  %s5997_s10 = int_to_ptr.vmem [resolvable:$false] %s5996_s10 }
  0x22   : > { %s5998_s11 = scalar_lea.vmem %s5997_s10, 8192  ;;  %p5999_p11 = scmp.lt.s32.totalorder %s6180_s14, %s5997_s10 }
  0x23   : > { %p5994_p2 = pnand %p5992_p0, %p5978_p1  ;;  %p6000_p4 = scmp.lt.s32.totalorder %s5998_s11, %s5991_s7 }
  0x25   : > { %p5995_p12 = pneg %p5994_p2  ;;  %p6001_p5 = por %p6000_p4, %p5999_p11 }
  0x27   : > { %p6002_p7 = pnand %p6001_p5, %p5995_p12 }
  0x29   : > { %6005 = shalt.err (!%p6002_p7)
}
  0x2a   : > { %s6075_s13 = smov 128   ;;  %s6076_s17 = smov 8  }
  0x2b   : > { %5930 = dma.hbm_to_vmem [thread:$0]  (!%p6176_p13), %s6172_s12, 4096, %s6180_s14, %s6182_s16, %s6075_s13, %s6075_s13, %s6076_s17  }
  0x2c   : > { %p4307_p9 = scmp.ge.s32.totalorder %s6072_s21, 1  ;;  %p206_p1 = scmp.lt.s32.totalorder %s6072_s21, 3 }
  0x2e   : > { %p207_p3 = pnand %p4307_p9, %p206_p1 }
  0x30   : > { %210 = sbr.rel (%p207_p3) target bundleno = 1267 (0x4f3), region = 40 }
  0x37   : > { %s6213_s23 = sand.u32 1, %s6064_s19  }
  0x38   : > { %s4308_s25 = sshll.u32 %s6213_s23, 8  ;;  %s213_s26 = scalar_lea.sflag [#allocation4], %s6213_s23 }
  0x39   : > { %s6217_s28 = scalar_lea.vmem [#allocation3], %s4308_s25 }
  0x3a   : > { %6051 = dma.done.wait (%p6152_p6), %s213_s26, 4096  }
  0x3b   : > { %6053 = vsyncadd (%p6152_p6), %s213_s26, 4294963200  ;;  %v274_v0 = vld [vmem:[%s7457_s1] sm:$0xff]  ;;  %v275_v1 = vld [vmem:[%s7457_s1 + $0x8] sm:$0xff]  ;;  %vm554_vm0 = vcmask 261120   ;;  %v6077_v59 = vmov 0.0   ;;  %vm557_vm1 = vcmask 254976  }
  0x3c   : > { %v276_v2 = vld [vmem:[%s7457_s1 + $0x10] sm:$0xff]  ;;  %v5559_v3 = vpack.c.bf16 %v275_v1, %v274_v0  ;;  %v277_v4 = vld [vmem:[%s7457_s1 + $0x18] sm:$0xff]  ;;  %v278_v6 = vld [vmem:[%s7457_s1 + $0x20] sm:$0xff]  ;;  %555 = vst.msk [vmem:[#allocation2] sm:$0xff] %vm554_vm0, %v6077_v59  ;;  %vm564_vm2 = vcmask 253952   ;;  %vm4138_vm3 = vcmask 64512  }
  0x3d   : > { %v5563_v5 = vpack.c.bf16 %v277_v4, %v276_v2  ;;  %v279_v7 = vld [vmem:[%s7457_s1 + $0x28] sm:$0xff]  ;;  %v242_v9 = vld [vmem:[%s6217_s28] sm:$0xff]  ;;  %v281_v11 = vld [vmem:[%s7457_s1 + $0x38] sm:$0xff]  ;;  %556 = vst.msk [vmem:[#allocation2 + $0x8] sm:$0xff] %vm554_vm0, %v6077_v59  ;;  %s4599_s7 = sshll.u32 %s6130_s22, 4  ;;  %s241_s9 = scalar_lea.vmem [#allocation6], %s6213_s23 }
  0x3e   : > { %5560 = vmatprep.subr.bf16.mxu0 %v5559_v3  ;;  %v5567_v8 = vpack.c.bf16 %v279_v7, %v278_v6  ;;  %v280_v10 = vld [vmem:[%s7457_s1 + $0x30] sm:$0xff]  ;;  %5007 = vmatprep.mubr.f32.mxu0 %v242_v9  ;;  %v282_v13 = vld [vmem:[%s7457_s1 + $0x40] sm:$0xff]  ;;  %v283_v14 = vld [vmem:[%s7457_s1 + $0x48] sm:$0xff]  ;;  %560 = vst.msk [vmem:[#allocation2 + $0x198] sm:$0xff] %vm554_vm0, %v6077_v59  ;;  %s4235_s10 = sshll.u32 %s241_s9, 4  ;;  %vm4220_vm4 = vcmask 57344   ;;  %s7412_s11 = scalar_lea.hbm %s7461_s5, %s4599_s7  ;;  %s7414_s10 = int_to_ptr.vmem [resolvable:$true] %s4235_s10 }
  0x3f   : > { %5562 = vmatpush3.bf16.msra.mxu0 %v5559_v3  ;;  %v5571_v12 = vpack.c.bf16 %v281_v11, %v280_v10  ;;  %v5575_v15 = vpack.c.bf16 %v283_v14, %v282_v13  ;;  %v284_v16 = vld [vmem:[%s7457_s1 + $0x50] sm:$0xff]  ;;  %v285_v17 = vld [vmem:[%s7457_s1 + $0x58] sm:$0xff]  ;;  %v286_v19 = vld [vmem:[%s7457_s1 + $0x60] sm:$0xff]  ;;  %561 = vst.msk [vmem:[#allocation2 + $0x1a0] sm:$0xff] %vm554_vm0, %v6077_v59  ;;  %s4223_s13 = scalar_lea.sflag [#allocation5], %s6213_s23  ;;  %s6006_s17 = scalar_lea.vmem %s7414_s10, 16 }
  0x40   : > { %5564 = vmatprep.subr.bf16.mxu0 %v5563_v5  ;;  %v5579_v18 = vpack.c.bf16 %v285_v17, %v284_v16  ;;  %v287_v20 = vld [vmem:[%s7457_s1 + $0x68] sm:$0xff]  ;;  %v288_v22 = vld [vmem:[%s7457_s1 + $0x70] sm:$0xff]  ;;  %v289_v23 = vld [vmem:[%s7457_s1 + $0x78] sm:$0xff]  ;;  %558 = vst.msk [vmem:[#allocation2 + $0x10] sm:$0x3] %vm557_vm1, %v6077_v59  ;;  %p6007_p6 = scmp.ne.s32.totalorder %s7414_s10, %s6006_s17  ;;  %p7489_p11 = scmp.ne.s32.totalorder %s7472_s30, 0 }
  0x41   : > { %v5583_v21 = vpack.c.bf16 %v287_v20, %v286_v19  ;;  %v5587_v24 = vpack.c.bf16 %v289_v23, %v288_v22  ;;  %v243_v25 = vld [vmem:[%s6217_s28 + $0x8] sm:$0xff]  ;;  %v244_v26 = vld [vmem:[%s6217_s28 + $0x10] sm:$0xff]  ;;  %v245_v27 = vld [vmem:[%s6217_s28 + $0x18] sm:$0xff]  ;;  %562 = vst.msk [vmem:[#allocation2 + $0x1a8] sm:$0x3] %vm557_vm1, %v6077_v59  ;;  %s6078_s22 = smov [#allocation6]  }
  0x42   : > { %v246_v28 = vld [vmem:[%s6217_s28 + $0x20] sm:$0xff]  ;;  %v247_v29 = vld [vmem:[%s6217_s28 + $0x28] sm:$0xff]  ;;  %v248_v30 = vld [vmem:[%s6217_s28 + $0x30] sm:$0xff]  ;;  %578 = vst.msk [vmem:[#allocation2 + $0x150] sm:$0x1] %vm564_vm2, %v6077_v59  ;;  %p6008_p12 = pnand %p6007_p6, %p7489_p11  ;;  %s6010_s25 = sshll.u32 %s6078_s22, 4  ;;  %s6011_s25 = int_to_ptr.vmem [resolvable:$false] %s6010_s25 }
  0x43   : > { %5566 = vmatpush3.bf16.msra.mxu0 %v5563_v5  ;;  %v249_v31 = vld [vmem:[%s6217_s28 + $0x38] sm:$0xff]  ;;  %v250_v32 = vld [vmem:[%s6217_s28 + $0x40] sm:$0xff]  ;;  %v251_v33 = vld [vmem:[%s6217_s28 + $0x48] sm:$0xff]  ;;  %565 = vst.msk [vmem:[#allocation2 + $0x18] sm:$0x1] %vm564_vm2, %v6077_v59  ;;  %s6012_s26 = scalar_lea.vmem %s6011_s25, 32  ;;  %p6013_p8 = scmp.lt.s32.totalorder %s7414_s10, %s6011_s25 }
  0x44   : > { %5568 = vmatprep.subr.bf16.mxu0 %v5567_v8  ;;  %v252_v34 = vld [vmem:[%s6217_s28 + $0x50] sm:$0xff]  ;;  %v253_v35 = vld [vmem:[%s6217_s28 + $0x58] sm:$0xff]  ;;  %v254_v36 = vld [vmem:[%s6217_s28 + $0x60] sm:$0xff]  ;;  %566 = vst.msk [vmem:[#allocation2 + $0x30] sm:$0x1] %vm564_vm2, %v6077_v59  ;;  %p6009_p13 = pneg %p6008_p12  ;;  %p6014_p10 = scmp.lt.s32.totalorder %s6012_s26, %s6006_s17 }
  0x45   : > { %v255_v37 = vld [vmem:[%s6217_s28 + $0x68] sm:$0xff]  ;;  %v256_v38 = vld [vmem:[%s6217_s28 + $0x70] sm:$0xff]  ;;  %v257_v39 = vld [vmem:[%s6217_s28 + $0x78] sm:$0xff]  ;;  %567 = vst.msk [vmem:[#allocation2 + $0x48] sm:$0x1] %vm564_vm2, %v6077_v59 }
  0x46   : > { %v258_v40 = vld [vmem:[%s6217_s28 + $0x80] sm:$0xff]  ;;  %v259_v41 = vld [vmem:[%s6217_s28 + $0x88] sm:$0xff]  ;;  %v260_v42 = vld [vmem:[%s6217_s28 + $0x90] sm:$0xff]  ;;  %568 = vst.msk [vmem:[#allocation2 + $0x60] sm:$0x1] %vm564_vm2, %v6077_v59  ;;  %p6015_p0 = por %p6014_p10, %p6013_p8 }
  0x47   : > { %5570 = vmatpush3.bf16.msra.mxu0 %v5567_v8  ;;  %v261_v43 = vld [vmem:[%s6217_s28 + $0x98] sm:$0xff]  ;;  %v262_v44 = vld [vmem:[%s6217_s28 + $0xa0] sm:$0xff]  ;;  %v263_v45 = vld [vmem:[%s6217_s28 + $0xa8] sm:$0xff]  ;;  %569 = vst.msk [vmem:[#allocation2 + $0x78] sm:$0x1] %vm564_vm2, %v6077_v59 }
  0x48   : > { %5572 = vmatprep.subr.bf16.mxu0 %v5571_v12  ;;  %v264_v46 = vld [vmem:[%s6217_s28 + $0xb0] sm:$0xff]  ;;  %v265_v47 = vld [vmem:[%s6217_s28 + $0xb8] sm:$0xff]  ;;  %v266_v48 = vld [vmem:[%s6217_s28 + $0xc0] sm:$0xff]  ;;  %570 = vst.msk [vmem:[#allocation2 + $0x90] sm:$0x1] %vm564_vm2, %v6077_v59  ;;  %p6016_p2 = pnand %p6015_p0, %p6009_p13 }
  0x49   : > { %v267_v49 = vld [vmem:[%s6217_s28 + $0xc8] sm:$0xff]  ;;  %v268_v50 = vld [vmem:[%s6217_s28 + $0xd0] sm:$0xff]  ;;  %v269_v51 = vld [vmem:[%s6217_s28 + $0xd8] sm:$0xff]  ;;  %571 = vst.msk [vmem:[#allocation2 + $0xa8] sm:$0x1] %vm564_vm2, %v6077_v59 }
  0x4a   : > { %v270_v52 = vld [vmem:[%s6217_s28 + $0xe0] sm:$0xff]  ;;  %v271_v53 = vld [vmem:[%s6217_s28 + $0xe8] sm:$0xff]  ;;  %v272_v54 = vld [vmem:[%s6217_s28 + $0xf0] sm:$0xff]  ;;  %572 = vst.msk [vmem:[#allocation2 + $0xc0] sm:$0x1] %vm564_vm2, %v6077_v59 }
  0x4b   : > { %5574 = vmatpush3.bf16.msra.mxu0 %v5571_v12  ;;  %v273_v55 = vld [vmem:[%s6217_s28 + $0xf8] sm:$0xff]  ;;  %v697_v56 = vld [vmem:[%s7459_s3 + $0x20] sm:$0xff]  ;;  %v699_v60 = vld [vmem:[%s7459_s3 + $0x30] sm:$0xff]  ;;  %573 = vst.msk [vmem:[#allocation2 + $0xd8] sm:$0x1] %vm564_vm2, %v6077_v59 }
  0x4c   : > { %5576 = vmatprep.subr.bf16.mxu0 %v5575_v15  ;;  %v698_v57 = vld [vmem:[%s7459_s3 + $0x28] sm:$0xff]  ;;  %v700_v61 = vld [vmem:[%s7459_s3 + $0x38] sm:$0xff]  ;;  %574 = vst.msk [vmem:[#allocation2 + $0xf0] sm:$0x1] %vm564_vm2, %v6077_v59  ;;  %575 = vst.msk [vmem:[#allocation2 + $0x108] sm:$0x1] %vm564_vm2, %v6077_v59 }
  0x4d   : > { %v5591_v58 = vpack.c.bf16 %v698_v57, %v697_v56  ;;  %v5595_v62 = vpack.c.bf16 %v700_v61, %v699_v60  ;;  %576 = vst.msk [vmem:[#allocation2 + $0x120] sm:$0x1] %vm564_vm2, %v6077_v59  ;;  %577 = vst.msk [vmem:[#allocation2 + $0x138] sm:$0x1] %vm564_vm2, %v6077_v59  ;;  %v665_v63 = vld [vmem:[#allocation2 + $0x1] sm:$0xff]  ;;  %v666_v0 = vld [vmem:[#allocation2 + $0x9] sm:$0xff] }
  0x4e   : > { %579 = vst.msk [vmem:[#allocation2 + $0x168] sm:$0x1] %vm564_vm2, %v6077_v59  ;;  %580 = vst.msk [vmem:[#allocation2 + $0x180] sm:$0x1] %vm564_vm2, %v6077_v59  ;;  %v1764_v1 = vld [vmem:[%s7459_s3 + $0x60] sm:$0xff]  ;;  %v1765_v2 = vld [vmem:[%s7459_s3 + $0x68] sm:$0xff] }
  0x4f   : > { %5578 = vmatpush3.bf16.msra.mxu0 %v5575_v15  ;;  %581 = vst.msk [vmem:[#allocation2 + $0x29] sm:$0x1] %vm564_vm2, %v6077_v59  ;;  %582 = vst.msk [vmem:[#allocation2 + $0x41] sm:$0x1] %vm564_vm2, %v6077_v59  ;;  %v6359_v3 = vpack.c.bf16 %v1765_v2, %v1764_v1  ;;  %v1766_v4 = vld [vmem:[%s7459_s3 + $0x70] sm:$0xff]  ;;  %v1767_v5 = vld [vmem:[%s7459_s3 + $0x78] sm:$0xff] }
  0x50   : > { %5580 = vmatprep.subr.bf16.mxu0 %v5579_v18  ;;  %583 = vst.msk [vmem:[#allocation2 + $0x59] sm:$0x1] %vm564_vm2, %v6077_v59  ;;  %584 = vst.msk [vmem:[#allocation2 + $0x71] sm:$0x1] %vm564_vm2, %v6077_v59  ;;  %v6369_v6 = vpack.c.bf16 %v1767_v5, %v1766_v4  ;;  %v661_v7 = vld [vmem:[%s7459_s3] sm:$0xff]  ;;  %v662_v8 = vld [vmem:[%s7459_s3 + $0x8] sm:$0xff] }
  0x51   : > { %585 = vst.msk [vmem:[#allocation2 + $0x89] sm:$0x1] %vm564_vm2, %v6077_v59  ;;  %586 = vst.msk [vmem:[#allocation2 + $0xa1] sm:$0x1] %vm564_vm2, %v6077_v59  ;;  %5663 = vmatprep.subr.bf16.mxu1 %v6359_v3  ;;  %v5599_v9 = vpack.c.bf16 %v662_v8, %v661_v7  ;;  %v2153_v10 = vld [vmem:[%s7459_s3 + $0x80] sm:$0xff]  ;;  %v2154_v11 = vld [vmem:[%s7459_s3 + $0x88] sm:$0xff] }
  0x52   : > { %587 = vst.msk [vmem:[#allocation2 + $0xb9] sm:$0x1] %vm564_vm2, %v6077_v59  ;;  %588 = vst.msk [vmem:[#allocation2 + $0xd1] sm:$0x1] %vm564_vm2, %v6077_v59  ;;  %5665 = vmatpush3.bf16.msra.mxu1 %v6359_v3  ;;  %v6385_v12 = vpack.c.bf16 %v2154_v11, %v2153_v10  ;;  %v663_v13 = vld [vmem:[%s7459_s3 + $0x10] sm:$0xff]  ;;  %v664_v14 = vld [vmem:[%s7459_s3 + $0x18] sm:$0xff] }
  0x53   : > { %5582 = vmatpush3.bf16.msra.mxu0 %v5579_v18  ;;  %589 = vst.msk [vmem:[#allocation2 + $0xe9] sm:$0x1] %vm564_vm2, %v6077_v59  ;;  %590 = vst.msk [vmem:[#allocation2 + $0x101] sm:$0x1] %vm564_vm2, %v6077_v59  ;;  %5664 = vmatprep.subr.bf16.mxu1 %v6369_v6  ;;  %v5603_v15 = vpack.c.bf16 %v664_v14, %v663_v13  ;;  %v6397_v16 = vld [vmem:[%s7458_s2] ss:$0 sm:$0xff] }
  0x54   : > { %5584 = vmatprep.subr.bf16.mxu0 %v5583_v21  ;;  %591 = vst.msk [vmem:[#allocation2 + $0x119] sm:$0x1] %vm564_vm2, %v6077_v59  ;;  %592 = vst.msk [vmem:[#allocation2 + $0x131] sm:$0x1] %vm564_vm2, %v6077_v59  ;;  %v1375_v20 = vld [vmem:[%s7459_s3 + $0x40] sm:$0xff] }
  0x55   : > { %593 = vst.msk [vmem:[#allocation2 + $0x149] sm:$0x1] %vm564_vm2, %v6077_v59  ;;  %594 = vst.msk [vmem:[#allocation2 + $0x161] sm:$0x1] %vm564_vm2, %v6077_v59 }
  0x56   : > { %595 = vst.msk [vmem:[#allocation2 + $0x179] sm:$0x1] %vm564_vm2, %v6077_v59  ;;  %596 = vst.msk [vmem:[#allocation2 + $0x191] sm:$0x1] %vm564_vm2, %v6077_v59  ;;  %5666 = vmatpush3.bf16.msra.mxu1 %v6369_v6 }
  0x57   : > { %5586 = vmatpush3.bf16.msra.mxu0 %v5583_v21  ;;  %5624 = vmatprep.subr.bf16.mxu1 %v6385_v12  ;;  %v1376_v21 = vld [vmem:[%s7459_s3 + $0x48] sm:$0xff] }
  0x58   : > { %5588 = vmatprep.subr.bf16.mxu0 %v5587_v24  ;;  %v6407_v23 = vpack.c.bf16 %v1376_v21, %v1375_v20 }
  0x5b   : > { %5590 = vmatpush3.bf16.msra.mxu0 %v5587_v24 }
  0x5c   : > { %5592 = vmatprep.subr.bf16.mxu0 %v5591_v58 }
  0x5e   : > { %5008 = vmatmul.mubr.f32.vlgmr.msra.gmra.mrb[0].mxu0 %v243_v25 }
  0x5f   : > { %5010 = vmatprep.mubr.f32.mxu0 %v244_v26  ;;  %5594 = vmatpush3.bf16.msra.mxu0 %v5591_v58 }
  0x60   : > { %5596 = vmatprep.subr.bf16.mxu0 %v5595_v62 }
  0x62   : > { %5011 = vmatmul.mubr.f32.gmra.mrb[2].mxu0 %v245_v27 }
  0x63   : > { %5013 = vmatprep.mubr.f32.mxu0 %v246_v28  ;;  %5598 = vmatpush3.bf16.msra.mxu0 %v5595_v62 }
  0x64   : > { %5600 = vmatprep.subr.bf16.mxu0 %v5599_v9 }
  0x66   : > { %5014 = vmatmul.mubr.f32.gmra.mrb[4].mxu0 %v247_v29 }
  0x67   : > { %5016 = vmatprep.mubr.f32.mxu0 %v248_v30 }
  0x6a   : > { %5017 = vmatmul.mubr.f32.gmra.mrb[6].mxu0 %v249_v31 }
  0x6b   : > { %5019 = vmatprep.mubr.f32.mxu0 %v250_v32 }
  0x6e   : > { %5020 = vmatmul.mubr.f32.gmra.mrb[8].mxu0 %v251_v33 }
  0x6f   : > { %5022 = vmatprep.mubr.f32.mxu0 %v252_v34 }
  0x72   : > { %5023 = vmatmul.mubr.f32.gmra.mrb[10].mxu0 %v253_v35 }
  0x73   : > { %5025 = vmatprep.mubr.f32.mxu0 %v254_v36 }
  0x76   : > { %5026 = vmatmul.mubr.f32.gmra.mrb[12].mxu0 %v255_v37 }
  0x77   : > { %5028 = vmatprep.mubr.f32.mxu0 %v256_v38 }
  0x7a   : > { %5029 = vmatmul.mubr.f32.gmra.mrb[14].mxu0 %v257_v39 }
  0x7b   : > { %5031 = vmatprep.mubr.f32.mxu0 %v258_v40 }
  0x7e   : > { %5032 = vmatmul.mubr.f32.gmra.mrb[16].mxu0 %v259_v41 }
  0x7f   : > { %5034 = vmatprep.mubr.f32.mxu0 %v260_v42 }
  0x82   : > { %5035 = vmatmul.mubr.f32.gmra.mrb[18].mxu0 %v261_v43 }
  0x83   : > { %5037 = vmatprep.mubr.f32.mxu0 %v262_v44 }
  0x86   : > { %5038 = vmatmul.mubr.f32.gmra.mrb[20].mxu0 %v263_v45 }
  0x87   : > { %5040 = vmatprep.mubr.f32.mxu0 %v264_v46 }
  0x8a   : > { %5041 = vmatmul.mubr.f32.gmra.mrb[22].mxu0 %v265_v47 }
  0x8b   : > { %5043 = vmatprep.mubr.f32.mxu0 %v266_v48 }
  0x8e   : > { %5044 = vmatmul.mubr.f32.gmra.mrb[24].mxu0 %v267_v49 }
  0x8f   : > { %5046 = vmatprep.mubr.f32.mxu0 %v268_v50 }
  0x92   : > { %5047 = vmatmul.mubr.f32.gmra.mrb[26].mxu0 %v269_v51 }
  0x93   : > { %5049 = vmatprep.mubr.f32.mxu0 %v270_v52 }
  0x96   : > { %5050 = vmatmul.mubr.f32.gmra.mrb[28].mxu0 %v271_v53 }
  0x97   : > { %5052 = vmatprep.mubr.f32.mxu0 %v272_v54 }
  0x9a   : > { %5053 = vmatmul.mubr.f32.gmra.mrb[30].mxu0 %v273_v55 }
  0x9b   : > { %5063 = vmatprep.mubr.msk.f32.mxu0 %vm554_vm0, %v665_v63 }
  0x9e   : > { %5064 = vmatmul.mubr.msk.f32.vlgmr.msra.gmra.mrb[32].mxu0 %vm554_vm0, %v666_v0 }
  0x9f   : > { %5602 = vmatpush3.bf16.msra.mxu0 %v5599_v9 }
  0xa0   : > { %5604 = vmatprep.subr.bf16.mxu0 %v5603_v15 }
  0xa3   : > { %5606 = vmatpush3.bf16.msra.mxu0 %v5603_v15 }
  0xa4   : > { %5608 = vmatprep.subr.bf16.mxu0 %v6407_v23 }
 0x131   : > { %v5009_v17 = vpop.f32.mrb[0].mxu0 }
 0x132   : > { %v369_v18 = vadd.f32 %v5009_v17, %v6397_v16  ;;  %v363_v19 = vpop.f32.mrb[1].mxu0 }
 0x133   : > { %v364_v22 = vadd.f32 %v6397_v16, %v363_v19 }
 0x134   : > { %v523_v24 = vmax.f32 %v369_v18, 0.0 }
 0x135   : > { %v522_v25 = vmax.f32 %v364_v22, 0.0  ;;  %v5012_v26 = vpop.f32.mrb[2].mxu0 }
 0x136   : > { %598 = vst.msk [vmem:[#allocation2 + $0x21] sm:$0xff] %vm554_vm0, %v523_v24  ;;  %v379_v27 = vadd.f32 %v5012_v26, %v6397_v16  ;;  %v373_v28 = vpop.f32.mrb[3].mxu0 }
 0x137   : > { %597 = vst.msk [vmem:[#allocation2 + $0x19] sm:$0xff] %vm554_vm0, %v522_v25  ;;  %v374_v29 = vadd.f32 %v6397_v16, %v373_v28 }
 0x138   : > { %v525_v30 = vmax.f32 %v379_v27, 0.0 }
 0x139   : > { %v524_v31 = vmax.f32 %v374_v29, 0.0  ;;  %v5015_v32 = vpop.f32.mrb[4].mxu0 }
 0x13a   : > { %600 = vst.msk [vmem:[#allocation2 + $0x39] sm:$0xff] %vm554_vm0, %v525_v30  ;;  %v389_v33 = vadd.f32 %v5015_v32, %v6397_v16  ;;  %v383_v34 = vpop.f32.mrb[5].mxu0 }
 0x13b   : > { %599 = vst.msk [vmem:[#allocation2 + $0x31] sm:$0xff] %vm554_vm0, %v524_v31  ;;  %v384_v35 = vadd.f32 %v6397_v16, %v383_v34 }
 0x13c   : > { %v527_v36 = vmax.f32 %v389_v33, 0.0 }
 0x13d   : > { %v526_v37 = vmax.f32 %v384_v35, 0.0  ;;  %v5018_v38 = vpop.f32.mrb[6].mxu0  ;;  %v6426_v43 = vld [vmem:[#allocation2 + $0x21] sm:$0xff] }
 0x13e   : > { %602 = vst.msk [vmem:[#allocation2 + $0x51] sm:$0xff] %vm554_vm0, %v527_v36  ;;  %v399_v39 = vadd.f32 %v5018_v38, %v6397_v16  ;;  %v393_v40 = vpop.f32.mrb[7].mxu0  ;;  %v6420_v41 = vld [vmem:[#allocation2 + $0x19] sm:$0xff] }
 0x13f   : > { %601 = vst.msk [vmem:[#allocation2 + $0x49] sm:$0xff] %vm554_vm0, %v526_v37  ;;  %v394_v42 = vadd.f32 %v6397_v16, %v393_v40  ;;  %5066 = vmatprep.mubr.msk.f32.mxu0 %vm554_vm0, %v6420_v41 }
 0x140   : > { %v529_v44 = vmax.f32 %v399_v39, 0.0  ;;  %5067 = vmatmul.mubr.msk.f32.gmra.mrb[34].mxu0 %vm554_vm0, %v6426_v43 }
 0x141   : > { %v528_v45 = vmax.f32 %v394_v42, 0.0  ;;  %v5021_v46 = vpop.f32.mrb[8].mxu0  ;;  %v6438_v51 = vld [vmem:[#allocation2 + $0x39] sm:$0xff] }
 0x142   : > { %604 = vst.msk [vmem:[#allocation2 + $0x69] sm:$0xff] %vm554_vm0, %v529_v44  ;;  %v409_v47 = vadd.f32 %v5021_v46, %v6397_v16  ;;  %v403_v48 = vpop.f32.mrb[9].mxu0  ;;  %v6432_v49 = vld [vmem:[#allocation2 + $0x31] sm:$0xff] }
 0x143   : > { %603 = vst.msk [vmem:[#allocation2 + $0x61] sm:$0xff] %vm554_vm0, %v528_v45  ;;  %v404_v50 = vadd.f32 %v6397_v16, %v403_v48  ;;  %5069 = vmatprep.mubr.msk.f32.mxu0 %vm554_vm0, %v6432_v49 }
 0x144   : > { %v531_v52 = vmax.f32 %v409_v47, 0.0  ;;  %5070 = vmatmul.mubr.msk.f32.gmra.mrb[36].mxu0 %vm554_vm0, %v6438_v51 }
 0x145   : > { %v530_v53 = vmax.f32 %v404_v50, 0.0  ;;  %v5024_v54 = vpop.f32.mrb[10].mxu0  ;;  %v6450_v59 = vld [vmem:[#allocation2 + $0x51] sm:$0xff] }
 0x146   : > { %606 = vst.msk [vmem:[#allocation2 + $0x81] sm:$0xff] %vm554_vm0, %v531_v52  ;;  %v419_v55 = vadd.f32 %v5024_v54, %v6397_v16  ;;  %v413_v56 = vpop.f32.mrb[11].mxu0  ;;  %v6444_v57 = vld [vmem:[#allocation2 + $0x49] sm:$0xff] }
 0x147   : > { %605 = vst.msk [vmem:[#allocation2 + $0x79] sm:$0xff] %vm554_vm0, %v530_v53  ;;  %v414_v58 = vadd.f32 %v6397_v16, %v413_v56  ;;  %5072 = vmatprep.mubr.msk.f32.mxu0 %vm554_vm0, %v6444_v57 }
 0x148   : > { %v533_v60 = vmax.f32 %v419_v55, 0.0  ;;  %5073 = vmatmul.mubr.msk.f32.gmra.mrb[38].mxu0 %vm554_vm0, %v6450_v59 }
 0x149   : > { %v532_v61 = vmax.f32 %v414_v58, 0.0  ;;  %v5027_v62 = vpop.f32.mrb[12].mxu0  ;;  %v6462_v4 = vld [vmem:[#allocation2 + $0x69] sm:$0xff] }
 0x14a   : > { %608 = vst.msk [vmem:[#allocation2 + $0x99] sm:$0xff] %vm554_vm0, %v533_v60  ;;  %v429_v63 = vadd.f32 %v5027_v62, %v6397_v16  ;;  %v423_v0 = vpop.f32.mrb[13].mxu0  ;;  %v6456_v1 = vld [vmem:[#allocation2 + $0x61] sm:$0xff] }
 0x14b   : > { %607 = vst.msk [vmem:[#allocation2 + $0x91] sm:$0xff] %vm554_vm0, %v532_v61  ;;  %v424_v2 = vadd.f32 %v6397_v16, %v423_v0  ;;  %5075 = vmatprep.mubr.msk.f32.mxu0 %vm554_vm0, %v6456_v1 }
 0x14c   : > { %v535_v5 = vmax.f32 %v429_v63, 0.0  ;;  %5076 = vmatmul.mubr.msk.f32.gmra.mrb[40].mxu0 %vm554_vm0, %v6462_v4 }
 0x14d   : > { %v534_v7 = vmax.f32 %v424_v2, 0.0  ;;  %v5030_v8 = vpop.f32.mrb[14].mxu0  ;;  %v6474_v14 = vld [vmem:[#allocation2 + $0x81] sm:$0xff] }
 0x14e   : > { %610 = vst.msk [vmem:[#allocation2 + $0xb1] sm:$0xff] %vm554_vm0, %v535_v5  ;;  %v439_v9 = vadd.f32 %v5030_v8, %v6397_v16  ;;  %v433_v10 = vpop.f32.mrb[15].mxu0  ;;  %v6468_v11 = vld [vmem:[#allocation2 + $0x79] sm:$0xff] }
 0x14f   : > { %609 = vst.msk [vmem:[#allocation2 + $0xa9] sm:$0xff] %vm554_vm0, %v534_v7  ;;  %v434_v13 = vadd.f32 %v6397_v16, %v433_v10  ;;  %5078 = vmatprep.mubr.msk.f32.mxu0 %vm554_vm0, %v6468_v11 }
 0x150   : > { %v537_v15 = vmax.f32 %v439_v9, 0.0  ;;  %5079 = vmatmul.mubr.msk.f32.gmra.mrb[42].mxu0 %vm554_vm0, %v6474_v14 }
 0x151   : > { %v536_v17 = vmax.f32 %v434_v13, 0.0  ;;  %v5033_v18 = vpop.f32.mrb[16].mxu0  ;;  %v6486_v24 = vld [vmem:[#allocation2 + $0x99] sm:$0xff] }
 0x152   : > { %612 = vst.msk [vmem:[#allocation2 + $0xc9] sm:$0xff] %vm554_vm0, %v537_v15  ;;  %v449_v19 = vadd.f32 %v5033_v18, %v6397_v16  ;;  %v443_v20 = vpop.f32.mrb[17].mxu0  ;;  %v6480_v21 = vld [vmem:[#allocation2 + $0x91] sm:$0xff] }
 0x153   : > { %611 = vst.msk [vmem:[#allocation2 + $0xc1] sm:$0xff] %vm554_vm0, %v536_v17  ;;  %v444_v22 = vadd.f32 %v6397_v16, %v443_v20  ;;  %5081 = vmatprep.mubr.msk.f32.mxu0 %vm554_vm0, %v6480_v21 }
 0x154   : > { %v539_v25 = vmax.f32 %v449_v19, 0.0  ;;  %5082 = vmatmul.mubr.msk.f32.gmra.mrb[44].mxu0 %vm554_vm0, %v6486_v24 }
 0x155   : > { %v538_v26 = vmax.f32 %v444_v22, 0.0  ;;  %v5036_v27 = vpop.f32.mrb[18].mxu0  ;;  %v6498_v32 = vld [vmem:[#allocation2 + $0xb1] sm:$0xff] }
 0x156   : > { %614 = vst.msk [vmem:[#allocation2 + $0xe1] sm:$0xff] %vm554_vm0, %v539_v25  ;;  %v459_v28 = vadd.f32 %v5036_v27, %v6397_v16  ;;  %v453_v29 = vpop.f32.mrb[19].mxu0  ;;  %v6492_v30 = vld [vmem:[#allocation2 + $0xa9] sm:$0xff] }
 0x157   : > { %613 = vst.msk [vmem:[#allocation2 + $0xd9] sm:$0xff] %vm554_vm0, %v538_v26  ;;  %v454_v31 = vadd.f32 %v6397_v16, %v453_v29  ;;  %5084 = vmatprep.mubr.msk.f32.mxu0 %vm554_vm0, %v6492_v30 }
 0x158   : > { %v541_v33 = vmax.f32 %v459_v28, 0.0  ;;  %5085 = vmatmul.mubr.msk.f32.gmra.mrb[46].mxu0 %vm554_vm0, %v6498_v32 }
 0x159   : > { %v540_v34 = vmax.f32 %v454_v31, 0.0  ;;  %v5039_v35 = vpop.f32.mrb[20].mxu0  ;;  %v6510_v40 = vld [vmem:[#allocation2 + $0xc9] sm:$0xff] }
 0x15a   : > { %616 = vst.msk [vmem:[#allocation2 + $0xf9] sm:$0xff] %vm554_vm0, %v541_v33  ;;  %v469_v36 = vadd.f32 %v5039_v35, %v6397_v16  ;;  %v463_v37 = vpop.f32.mrb[21].mxu0  ;;  %v6504_v38 = vld [vmem:[#allocation2 + $0xc1] sm:$0xff] }
 0x15b   : > { %615 = vst.msk [vmem:[#allocation2 + $0xf1] sm:$0xff] %vm554_vm0, %v540_v34  ;;  %v464_v39 = vadd.f32 %v6397_v16, %v463_v37  ;;  %5087 = vmatprep.mubr.msk.f32.mxu0 %vm554_vm0, %v6504_v38  ;;  %v2156_v37 = vld [vmem:[%s7459_s3 + $0x98] sm:$0xff] }
 0x15c   : > { %v543_v42 = vmax.f32 %v469_v36, 0.0  ;;  %5088 = vmatmul.mubr.msk.f32.gmra.mrb[48].mxu0 %vm554_vm0, %v6510_v40  ;;  %v2155_v36 = vld [vmem:[%s7459_s3 + $0x90] sm:$0xff] }
 0x15d   : > { %v542_v44 = vmax.f32 %v464_v39, 0.0  ;;  %v5042_v45 = vpop.f32.mrb[22].mxu0  ;;  %v6522_v52 = vld [vmem:[#allocation2 + $0xe1] sm:$0xff] }
 0x15e   : > { %618 = vst.msk [vmem:[#allocation2 + $0x111] sm:$0xff] %vm554_vm0, %v543_v42  ;;  %v479_v46 = vadd.f32 %v5042_v45, %v6397_v16  ;;  %v473_v47 = vpop.f32.mrb[23].mxu0  ;;  %v6516_v48 = vld [vmem:[#allocation2 + $0xd9] sm:$0xff] }
 0x15f   : > { %617 = vst.msk [vmem:[#allocation2 + $0x109] sm:$0xff] %vm554_vm0, %v542_v44  ;;  %v474_v50 = vadd.f32 %v6397_v16, %v473_v47  ;;  %5090 = vmatprep.mubr.msk.f32.mxu0 %vm554_vm0, %v6516_v48 }
 0x160   : > { %v545_v53 = vmax.f32 %v479_v46, 0.0  ;;  %5091 = vmatmul.mubr.msk.f32.gmra.mrb[50].mxu0 %vm554_vm0, %v6522_v52  ;;  %v5627_v46 = vpack.c.bf16 %v2156_v37, %v2155_v36  ;;  %v1346_v37 = vld [vmem:[#allocation2 + $0x22] sm:$0xff] }
 0x161   : > { %v544_v54 = vmax.f32 %v474_v50, 0.0  ;;  %v5045_v55 = vpop.f32.mrb[24].mxu0  ;;  %v6534_v62 = vld [vmem:[#allocation2 + $0xf9] sm:$0xff] }
 0x162   : > { %620 = vst.msk [vmem:[#allocation2 + $0x129] sm:$0xff] %vm554_vm0, %v545_v53  ;;  %v489_v56 = vadd.f32 %v5045_v55, %v6397_v16  ;;  %v483_v58 = vpop.f32.mrb[25].mxu0  ;;  %v6528_v60 = vld [vmem:[#allocation2 + $0xf1] sm:$0xff]  ;;  %v2542_v50 = vld [vmem:[%s7459_s3 + $0xa0] sm:$0xff]  ;;  %v2543_v53 = vld [vmem:[%s7459_s3 + $0xa8] sm:$0xff] }
 0x163   : > { %619 = vst.msk [vmem:[#allocation2 + $0x121] sm:$0xff] %vm554_vm0, %v544_v54  ;;  %v484_v61 = vadd.f32 %v6397_v16, %v483_v58  ;;  %5093 = vmatprep.mubr.msk.f32.mxu0 %vm554_vm0, %v6528_v60  ;;  %v629_v54 = vld [vmem:[#allocation2] sm:$0xff] }
 0x164   : > { %v547_v63 = vmax.f32 %v489_v56, 0.0  ;;  %5094 = vmatmul.mubr.msk.f32.gmra.mrb[52].mxu0 %vm554_vm0, %v6534_v62 }
 0x165   : > { %v546_v0 = vmax.f32 %v484_v61, 0.0  ;;  %v5048_v2 = vpop.f32.mrb[26].mxu0  ;;  %v6546_v10 = vld [vmem:[#allocation2 + $0x111] sm:$0xff]  ;;  %v5631_v61 = vpack.c.bf16 %v2543_v53, %v2542_v50 }
 0x166   : > { %622 = vst.msk [vmem:[#allocation2 + $0x141] sm:$0xff] %vm554_vm0, %v547_v63  ;;  %v499_v5 = vadd.f32 %v5048_v2, %v6397_v16  ;;  %v493_v7 = vpop.f32.mrb[27].mxu0  ;;  %v6540_v8 = vld [vmem:[#allocation2 + $0x109] sm:$0xff]  ;;  %v6876_v53 = vld [vmem:[#allocation2 + $0x52] sm:$0xff] }
 0x167   : > { %621 = vst.msk [vmem:[#allocation2 + $0x139] sm:$0xff] %vm554_vm0, %v546_v0  ;;  %v494_v9 = vadd.f32 %v6397_v16, %v493_v7  ;;  %5096 = vmatprep.mubr.msk.f32.mxu0 %vm554_vm0, %v6540_v8  ;;  %v1378_v0 = vld [vmem:[%s7459_s3 + $0x58] sm:$0xff]  ;;  %v630_v2 = vld [vmem:[#allocation2 + $0x8] sm:$0xff] }
 0x168   : > { %v549_v13 = vmax.f32 %v499_v5, 0.0  ;;  %5097 = vmatmul.mubr.msk.f32.gmra.mrb[54].mxu0 %vm554_vm0, %v6546_v10  ;;  %v6870_v50 = vld [vmem:[#allocation2 + $0x4a] sm:$0xff] }
 0x169   : > { %v548_v15 = vmax.f32 %v494_v9, 0.0  ;;  %v5051_v17 = vpop.f32.mrb[28].mxu0  ;;  %v6558_v25 = vld [vmem:[#allocation2 + $0x129] sm:$0xff] }
 0x16a   : > { %624 = vst.msk [vmem:[#allocation2 + $0x159] sm:$0xff] %vm554_vm0, %v549_v13  ;;  %v509_v18 = vadd.f32 %v5051_v17, %v6397_v16  ;;  %v503_v19 = vpop.f32.mrb[29].mxu0  ;;  %v6552_v20 = vld [vmem:[#allocation2 + $0x121] sm:$0xff]  ;;  %v2544_v9 = vld [vmem:[%s7459_s3 + $0xb0] sm:$0xff]  ;;  %v2545_v13 = vld [vmem:[%s7459_s3 + $0xb8] sm:$0xff] }
 0x16b   : > { %623 = vst.msk [vmem:[#allocation2 + $0x151] sm:$0xff] %vm554_vm0, %v548_v15  ;;  %v504_v22 = vadd.f32 %v6397_v16, %v503_v19  ;;  %5099 = vmatprep.mubr.msk.f32.mxu0 %vm554_vm0, %v6552_v20  ;;  %v6643_v17 = vld [vmem:[#allocation2 + $0x18] sm:$0xff]  ;;  %v6650_v19 = vld [vmem:[#allocation2 + $0x20] sm:$0xff] }
 0x16c   : > { %v551_v26 = vmax.f32 %v509_v18, 0.0  ;;  %5100 = vmatmul.mubr.msk.f32.gmra.mrb[56].mxu0 %vm554_vm0, %v6558_v25  ;;  %v5635_v18 = vpack.c.bf16 %v2545_v13, %v2544_v9  ;;  %v6919_v9 = vld [vmem:[#allocation2 + $0xaa] sm:$0xff]  ;;  %v6925_v13 = vld [vmem:[#allocation2 + $0xb2] sm:$0xff] }
 0x16d   : > { %v550_v27 = vmax.f32 %v504_v22, 0.0  ;;  %v5054_v28 = vpop.f32.mrb[30].mxu0  ;;  %v6570_v35 = vld [vmem:[#allocation2 + $0x141] sm:$0xff]  ;;  %v6656_v22 = vld [vmem:[#allocation2 + $0x30] sm:$0xff] }
 0x16e   : > { %626 = vst.msk [vmem:[#allocation2 + $0x171] sm:$0xff] %vm554_vm0, %v551_v26  ;;  %v519_v29 = vadd.f32 %v5054_v28, %v6397_v16  ;;  %v513_v31 = vpop.f32.mrb[31].mxu0  ;;  %v6564_v33 = vld [vmem:[#allocation2 + $0x139] sm:$0xff] }
 0x16f   : > { %625 = vst.msk [vmem:[#allocation2 + $0x169] sm:$0xff] %vm554_vm0, %v550_v27  ;;  %v514_v34 = vadd.f32 %v6397_v16, %v513_v31  ;;  %5102 = vmatprep.mubr.msk.f32.mxu0 %vm554_vm0, %v6564_v33  ;;  %v2932_v26 = vld [vmem:[%s7459_s3 + $0xc0] sm:$0xff]  ;;  %v6676_v27 = vld [vmem:[#allocation2 + $0x48] sm:$0xff]  ;;  %v6702_v28 = vld [vmem:[#allocation2 + $0x78] sm:$0xff] }
 0x170   : > { %v553_v39 = vmax.f32 %v519_v29, 0.0  ;;  %5103 = vmatmul.mubr.msk.f32.gmra.mrb[58].mxu0 %vm554_vm0, %v6570_v35  ;;  %v1344_v29 = vld [vmem:[#allocation2 + $0xa] sm:$0xff] }
 0x171   : > { %v552_v42 = vmax.f32 %v514_v34, 0.0  ;;  %v6592_v47 = vld [vmem:[#allocation2 + $0x159] sm:$0xff] }
 0x172   : > { %628 = vst.msk [vmem:[#allocation2 + $0x189] sm:$0xff] %vm554_vm0, %v553_v39  ;;  %v6581_v16 = vld [vmem:[#allocation2 + $0x151] sm:$0xff] }
 0x173   : > { %v6583_v44 = vld [vmem:[#allocation2 + $0x150] sm:$0xff]  ;;  %v6585_v45 = vld [vmem:[#allocation2 + $0x158] sm:$0xff]  ;;  %627 = vst.msk [vmem:[#allocation2 + $0x181] sm:$0xff] %vm554_vm0, %v552_v42  ;;  %5105 = vmatprep.mubr.msk.f32.mxu0 %vm554_vm0, %v6581_v16  ;;  %v3321_v42 = vld [vmem:[%s7459_s3 + $0xe0] sm:$0xff] }
 0x174   : > { %5270 = vmatprep.mubr.msk.f32.mxu1 %vm554_vm0, %v6583_v44  ;;  %5106 = vmatmul.mubr.msk.f32.gmra.mrb[60].mxu0 %vm554_vm0, %v6592_v47  ;;  %v2935_v34 = vld [vmem:[%s7459_s3 + $0xd8] sm:$0xff] }
 0x175   : > { %5271 = vmatmul.mubr.msk.f32.vlgmr.msra.gmra.mrb[0].mxu1 %vm554_vm0, %v6585_v45  ;;  %v6615_v63 = vld [vmem:[#allocation2 + $0x171] sm:$0xff] }
 0x176   : > { %5626 = vmatpush3.bf16.msra.mxu1 %v6385_v12  ;;  %v6605_v55 = vld [vmem:[#allocation2 + $0x169] sm:$0xff]  ;;  %v6848_v39 = vld [vmem:[#allocation2 + $0x32] sm:$0xff] }
 0x177   : > { %v6607_v56 = vld [vmem:[#allocation2 + $0x168] sm:$0xff]  ;;  %v6609_v58 = vld [vmem:[#allocation2 + $0x170] sm:$0xff]  ;;  %5628 = vmatprep.subr.bf16.mxu1 %v5627_v46  ;;  %5108 = vmatprep.mubr.msk.f32.mxu0 %vm554_vm0, %v6605_v55 }
 0x178   : > { %5273 = vmatprep.mubr.msk.f32.mxu1 %vm554_vm0, %v6607_v56  ;;  %5109 = vmatmul.mubr.msk.f32.gmra.mrb[62].mxu0 %vm554_vm0, %v6615_v63  ;;  %v1377_v12 = vld [vmem:[%s7459_s3 + $0x50] sm:$0xff] }
 0x179   : > { %5274 = vmatmul.mubr.msk.f32.gmra.mrb[2].mxu1 %vm554_vm0, %v6609_v58  ;;  %5119 = vmatprep.mubr.msk.f32.mxu0 %vm554_vm0, %v629_v54  ;;  %v5611_v15 = vpack.c.bf16 %v1378_v0, %v1377_v12  ;;  %v6831_v31 = vld [vmem:[#allocation2 + $0x189] sm:$0xff]  ;;  %v6907_v0 = vld [vmem:[#allocation2 + $0x92] sm:$0xff] }
 0x17a   : > { %5630 = vmatpush3.bf16.msra.mxu1 %v5627_v46  ;;  %v6628_v5 = vld [vmem:[#allocation2 + $0x180] sm:$0xff]  ;;  %v6630_v7 = vld [vmem:[#allocation2 + $0x188] sm:$0xff] }
 0x17b   : > { %5632 = vmatprep.subr.bf16.mxu1 %v5631_v61  ;;  %5276 = vmatprep.mubr.msk.f32.mxu1 %vm554_vm0, %v6628_v5  ;;  %v6889_v54 = vld [vmem:[#allocation2 + $0x6a] sm:$0xff]  ;;  %v6901_v12 = vld [vmem:[#allocation2 + $0x82] sm:$0xff] }
 0x17c   : > { %5120 = vmatmul.mubr.msk.f32.vlgmr.msra.gmra.mrb[32].mxu0 %vm554_vm0, %v630_v2  ;;  %v6913_v2 = vld [vmem:[#allocation2 + $0x9a] sm:$0xff] }
 0x17d   : > { %5277 = vmatmul.mubr.msk.f32.gmra.mrb[4].mxu1 %vm554_vm0, %v6630_v7  ;;  %5122 = vmatprep.mubr.msk.f32.mxu0 %vm554_vm0, %v6643_v17 }
 0x17e   : > { %5287 = vmatprep.mubr.msk.f32.mxu1 %vm554_vm0, %v6420_v41  ;;  %5610 = vmatpush3.bf16.msra.mxu0 %v6407_v23  ;;  %v2933_v41 = vld [vmem:[%s7459_s3 + $0xc8] sm:$0xff]  ;;  %v6668_v23 = vld [vmem:[#allocation2 + $0x38] sm:$0xff] }
 0x17f   : > { %5612 = vmatprep.subr.bf16.mxu0 %v5611_v15 }
 0x180   : > { %5123 = vmatmul.mubr.msk.f32.gmra.mrb[34].mxu0 %vm554_vm0, %v6650_v19 }
 0x181   : > { %5288 = vmatmul.mubr.msk.f32.vlgmr.msra.gmra.mrb[6].mxu1 %vm554_vm0, %v6426_v43  ;;  %5125 = vmatprep.mubr.msk.f32.mxu0 %vm554_vm0, %v6656_v22  ;;  %v6670_v43 = vpack.c.bf16 %v2933_v41, %v2932_v26  ;;  %v6943_v26 = vld [vmem:[#allocation2 + $0xda] sm:$0xff]  ;;  %v6949_v41 = vld [vmem:[#allocation2 + $0xe2] sm:$0xff] }
 0x182   : > { %5634 = vmatpush3.bf16.msra.mxu1 %v5631_v61  ;;  %5290 = vmatprep.mubr.msk.f32.mxu1 %vm554_vm0, %v6432_v49  ;;  %v6683_v49 = vld [vmem:[#allocation2 + $0x50] sm:$0xff]  ;;  %v6895_v61 = vld [vmem:[#allocation2 + $0x7a] sm:$0xff] }
 0x183   : > { %5636 = vmatprep.subr.bf16.mxu1 %v5635_v18  ;;  %5614 = vmatpush3.bf16.msra.mxu0 %v5611_v15  ;;  %v6931_v15 = vld [vmem:[#allocation2 + $0xc2] sm:$0xff] }
 0x184   : > { %5126 = vmatmul.mubr.msk.f32.gmra.mrb[36].mxu0 %vm554_vm0, %v6668_v23  ;;  %5616 = vmatprep.subr.bf16.mxu0 %v6359_v3 }
 0x185   : > { %5291 = vmatmul.mubr.msk.f32.gmra.mrb[8].mxu1 %vm554_vm0, %v6438_v51  ;;  %5128 = vmatprep.mubr.msk.f32.mxu0 %vm554_vm0, %v6676_v27  ;;  %v6690_v51 = vld [vmem:[#allocation2 + $0x60] sm:$0xff] }
 0x186   : > { %5293 = vmatprep.mubr.msk.f32.mxu1 %vm554_vm0, %v6444_v57  ;;  %5638 = vmatpush3.bf16.msra.mxu1 %v5635_v18  ;;  %v6696_v57 = vld [vmem:[#allocation2 + $0x68] sm:$0xff] }
 0x187   : > { %5640 = vmatprep.subr.bf16.mxu1 %v6670_v43  ;;  %v6937_v18 = vld [vmem:[#allocation2 + $0xca] sm:$0xff] }
 0x188   : > { %5129 = vmatmul.mubr.msk.f32.gmra.mrb[38].mxu0 %vm554_vm0, %v6683_v49 }
 0x189   : > { %5294 = vmatmul.mubr.msk.f32.gmra.mrb[10].mxu1 %vm554_vm0, %v6450_v59  ;;  %5131 = vmatprep.mubr.msk.f32.mxu0 %vm554_vm0, %v6690_v51  ;;  %v6708_v59 = vld [vmem:[#allocation2 + $0x80] sm:$0xff] }
 0x18a   : > { %5296 = vmatprep.mubr.msk.f32.mxu1 %vm554_vm0, %v6456_v1  ;;  %v6714_v1 = vld [vmem:[#allocation2 + $0x90] sm:$0xff] }
 0x18c   : > { %5132 = vmatmul.mubr.msk.f32.gmra.mrb[40].mxu0 %vm554_vm0, %v6696_v57 }
 0x18d   : > { %5297 = vmatmul.mubr.msk.f32.gmra.mrb[12].mxu1 %vm554_vm0, %v6462_v4  ;;  %5134 = vmatprep.mubr.msk.f32.mxu0 %vm554_vm0, %v6702_v28  ;;  %v6720_v4 = vld [vmem:[#allocation2 + $0x98] sm:$0xff] }
 0x18e   : > { %5299 = vmatprep.mubr.msk.f32.mxu1 %vm554_vm0, %v6468_v11  ;;  %v6726_v11 = vld [vmem:[#allocation2 + $0xa8] sm:$0xff] }
 0x190   : > { %5135 = vmatmul.mubr.msk.f32.gmra.mrb[42].mxu0 %vm554_vm0, %v6708_v59 }
 0x191   : > { %5300 = vmatmul.mubr.msk.f32.gmra.mrb[14].mxu1 %vm554_vm0, %v6474_v14  ;;  %5137 = vmatprep.mubr.msk.f32.mxu0 %vm554_vm0, %v6714_v1  ;;  %v6732_v14 = vld [vmem:[#allocation2 + $0xb0] sm:$0xff] }
 0x192   : > { %5302 = vmatprep.mubr.msk.f32.mxu1 %vm554_vm0, %v6480_v21  ;;  %v6738_v21 = vld [vmem:[#allocation2 + $0xc0] sm:$0xff] }
 0x194   : > { %5138 = vmatmul.mubr.msk.f32.gmra.mrb[44].mxu0 %vm554_vm0, %v6720_v4 }
 0x195   : > { %5303 = vmatmul.mubr.msk.f32.gmra.mrb[16].mxu1 %vm554_vm0, %v6486_v24  ;;  %5140 = vmatprep.mubr.msk.f32.mxu0 %vm554_vm0, %v6726_v11  ;;  %v6744_v24 = vld [vmem:[#allocation2 + $0xc8] sm:$0xff] }
 0x196   : > { %5305 = vmatprep.mubr.msk.f32.mxu1 %vm554_vm0, %v6492_v30  ;;  %v6750_v30 = vld [vmem:[#allocation2 + $0xd8] sm:$0xff] }
 0x198   : > { %5141 = vmatmul.mubr.msk.f32.gmra.mrb[46].mxu0 %vm554_vm0, %v6732_v14 }
 0x199   : > { %5306 = vmatmul.mubr.msk.f32.gmra.mrb[18].mxu1 %vm554_vm0, %v6498_v32  ;;  %5143 = vmatprep.mubr.msk.f32.mxu0 %vm554_vm0, %v6738_v21  ;;  %v6756_v32 = vld [vmem:[#allocation2 + $0xe0] sm:$0xff] }
 0x19a   : > { %5308 = vmatprep.mubr.msk.f32.mxu1 %vm554_vm0, %v6504_v38  ;;  %v6762_v38 = vld [vmem:[#allocation2 + $0xf0] sm:$0xff] }
 0x19c   : > { %5144 = vmatmul.mubr.msk.f32.gmra.mrb[48].mxu0 %vm554_vm0, %v6744_v24 }
 0x19d   : > { %5309 = vmatmul.mubr.msk.f32.gmra.mrb[20].mxu1 %vm554_vm0, %v6510_v40  ;;  %5146 = vmatprep.mubr.msk.f32.mxu0 %vm554_vm0, %v6750_v30  ;;  %v6768_v40 = vld [vmem:[#allocation2 + $0xf8] sm:$0xff] }
 0x19e   : > { %5311 = vmatprep.mubr.msk.f32.mxu1 %vm554_vm0, %v6516_v48  ;;  %v6774_v48 = vld [vmem:[#allocation2 + $0x108] sm:$0xff] }
 0x1a0   : > { %5147 = vmatmul.mubr.msk.f32.gmra.mrb[50].mxu0 %vm554_vm0, %v6756_v32 }
 0x1a1   : > { %5312 = vmatmul.mubr.msk.f32.gmra.mrb[22].mxu1 %vm554_vm0, %v6522_v52  ;;  %5149 = vmatprep.mubr.msk.f32.mxu0 %vm554_vm0, %v6762_v38  ;;  %v6780_v52 = vld [vmem:[#allocation2 + $0x110] sm:$0xff] }
 0x1a2   : > { %5314 = vmatprep.mubr.msk.f32.mxu1 %vm554_vm0, %v6528_v60  ;;  %v6786_v60 = vld [vmem:[#allocation2 + $0x120] sm:$0xff] }
 0x1a4   : > { %5150 = vmatmul.mubr.msk.f32.gmra.mrb[52].mxu0 %vm554_vm0, %v6768_v40 }
 0x1a5   : > { %5315 = vmatmul.mubr.msk.f32.gmra.mrb[24].mxu1 %vm554_vm0, %v6534_v62  ;;  %5152 = vmatprep.mubr.msk.f32.mxu0 %vm554_vm0, %v6774_v48  ;;  %v6792_v62 = vld [vmem:[#allocation2 + $0x128] sm:$0xff] }
 0x1a6   : > { %5317 = vmatprep.mubr.msk.f32.mxu1 %vm554_vm0, %v6540_v8  ;;  %v6798_v8 = vld [vmem:[#allocation2 + $0x138] sm:$0xff] }
 0x1a8   : > { %5153 = vmatmul.mubr.msk.f32.gmra.mrb[54].mxu0 %vm554_vm0, %v6780_v52 }
 0x1a9   : > { %5318 = vmatmul.mubr.msk.f32.gmra.mrb[26].mxu1 %vm554_vm0, %v6546_v10  ;;  %5155 = vmatprep.mubr.msk.f32.mxu0 %vm554_vm0, %v6786_v60  ;;  %v6804_v10 = vld [vmem:[#allocation2 + $0x140] sm:$0xff] }
 0x1aa   : > { %5320 = vmatprep.mubr.msk.f32.mxu1 %vm554_vm0, %v6552_v20  ;;  %v1343_v20 = vld [vmem:[#allocation2 + $0x2] sm:$0xff] }
 0x1ac   : > { %5156 = vmatmul.mubr.msk.f32.gmra.mrb[56].mxu0 %vm554_vm0, %v6792_v62 }
 0x1ad   : > { %5321 = vmatmul.mubr.msk.f32.gmra.mrb[28].mxu1 %vm554_vm0, %v6558_v25  ;;  %5158 = vmatprep.mubr.msk.f32.mxu0 %vm554_vm0, %v6798_v8  ;;  %v6826_v25 = vld [vmem:[#allocation2 + $0x181] sm:$0xff] }
 0x1ae   : > { %5323 = vmatprep.mubr.msk.f32.mxu1 %vm554_vm0, %v6564_v33  ;;  %v2934_v33 = vld [vmem:[%s7459_s3 + $0xd0] sm:$0xff] }
 0x1af   : > { %v5643_v36 = vpack.c.bf16 %v2935_v34, %v2934_v33  ;;  %v6973_v33 = vld [vmem:[#allocation2 + $0x112] sm:$0xff]  ;;  %v6979_v34 = vld [vmem:[#allocation2 + $0x122] sm:$0xff] }
 0x1b0   : > { %5159 = vmatmul.mubr.msk.f32.gmra.mrb[58].mxu0 %vm554_vm0, %v6804_v10 }
 0x1b1   : > { %5324 = vmatmul.mubr.msk.f32.gmra.mrb[30].mxu1 %vm554_vm0, %v6570_v35  ;;  %5161 = vmatprep.mubr.msk.f32.mxu0 %vm554_vm0, %v6583_v44  ;;  %v1345_v35 = vld [vmem:[#allocation2 + $0x1a] sm:$0xff] }
 0x1b2   : > { %5326 = vmatprep.mubr.msk.f32.mxu1 %vm554_vm0, %v6581_v16  ;;  %v3322_v16 = vld [vmem:[%s7459_s3 + $0xe8] sm:$0xff] }
 0x1b3   : > { %v6864_v46 = vpack.c.bf16 %v3322_v16, %v3321_v42  ;;  %v7003_v42 = vld [vmem:[#allocation2 + $0x152] sm:$0xff]  ;;  %v7009_v16 = vld [vmem:[#allocation2 + $0x15a] sm:$0xff] }
 0x1b4   : > { %5162 = vmatmul.mubr.msk.f32.gmra.mrb[60].mxu0 %vm554_vm0, %v6585_v45  ;;  %7478 = vst [vmem:[#allocation12_spill] sm:$0xff] %v7003_v42  ;;  %7479 = vst [vmem:[#allocation13_spill] sm:$0xff] %v7009_v16 }
 0x1b5   : > { %5327 = vmatmul.mubr.msk.f32.gmra.mrb[0].mxu1 %vm554_vm0, %v6592_v47  ;;  %5164 = vmatprep.mubr.msk.f32.mxu0 %vm554_vm0, %v6607_v56 }
 0x1b6   : > { %5329 = vmatprep.mubr.msk.f32.mxu1 %vm554_vm0, %v6605_v55 }
 0x1b8   : > { %5165 = vmatmul.mubr.msk.f32.gmra.mrb[62].mxu0 %vm554_vm0, %v6609_v58 }
 0x1b9   : > { %5330 = vmatmul.mubr.msk.f32.gmra.mrb[2].mxu1 %vm554_vm0, %v6615_v63  ;;  %5175 = vmatprep.mubr.msk.f32.mxu0 %vm554_vm0, %v1343_v20  ;;  %v6961_v20 = vld [vmem:[#allocation2 + $0xfa] sm:$0xff] }
 0x1ba   : > { %5332 = vmatprep.mubr.msk.f32.mxu1 %vm554_vm0, %v6826_v25 }
 0x1bc   : > { %5176 = vmatmul.mubr.msk.f32.vlgmr.msra.gmra.mrb[32].mxu0 %vm554_vm0, %v1344_v29  ;;  %v6967_v29 = vld [vmem:[#allocation2 + $0x10a] sm:$0xff] }
 0x1bd   : > { %5333 = vmatmul.mubr.msk.f32.gmra.mrb[4].mxu1 %vm554_vm0, %v6831_v31  ;;  %5178 = vmatprep.mubr.msk.f32.mxu0 %vm554_vm0, %v1345_v35 }
 0x1be   : > { %5343 = vmatprep.mubr.msk.f32.mxu1 %vm554_vm0, %v1345_v35  ;;  %5618 = vmatpush3.bf16.msra.mxu0 %v6359_v3  ;;  %v6861_v3 = vld [vmem:[#allocation2 + $0x3a] sm:$0xff]  ;;  %v6985_v35 = vld [vmem:[#allocation2 + $0x12a] sm:$0xff] }
 0x1bf   : > { %5620 = vmatprep.subr.bf16.mxu0 %v6369_v6  ;;  %7475 = vst [vmem:[#allocation9_spill] sm:$0xff] %v6985_v35 }
 0x1c0   : > { %5179 = vmatmul.mubr.msk.f32.gmra.mrb[34].mxu0 %vm554_vm0, %v1346_v37 }
 0x1c1   : > { %5344 = vmatmul.mubr.msk.f32.vlgmr.msra.gmra.mrb[6].mxu1 %vm554_vm0, %v1346_v37  ;;  %5181 = vmatprep.mubr.msk.f32.mxu0 %vm554_vm0, %v6848_v39  ;;  %v6997_v37 = vld [vmem:[#allocation2 + $0x142] sm:$0xff] }
 0x1c2   : > { %5642 = vmatpush3.bf16.msra.mxu1 %v6670_v43  ;;  %5346 = vmatprep.mubr.msk.f32.mxu1 %vm554_vm0, %v6848_v39  ;;  %v6955_v43 = vld [vmem:[#allocation2 + $0xf2] sm:$0xff]  ;;  %7477 = vst [vmem:[#allocation11_spill] sm:$0xff] %v6997_v37 }
 0x1c3   : > { %5644 = vmatprep.subr.bf16.mxu1 %v5643_v36  ;;  %5622 = vmatpush3.bf16.msra.mxu0 %v6369_v6  ;;  %v6883_v6 = vld [vmem:[#allocation2 + $0x62] sm:$0xff] }
 0x1c4   : > { %5182 = vmatmul.mubr.msk.f32.gmra.mrb[36].mxu0 %vm554_vm0, %v6861_v3 }
 0x1c5   : > { %5347 = vmatmul.mubr.msk.f32.gmra.mrb[8].mxu1 %vm554_vm0, %v6861_v3  ;;  %5184 = vmatprep.mubr.msk.f32.mxu0 %vm554_vm0, %v6870_v50 }
 0x1c6   : > { %5349 = vmatprep.mubr.msk.f32.mxu1 %vm554_vm0, %v6870_v50  ;;  %5646 = vmatpush3.bf16.msra.mxu1 %v5643_v36  ;;  %v6991_v36 = vld [vmem:[#allocation2 + $0x13a] sm:$0xff] }
 0x1c7   : > { %5648 = vmatprep.subr.bf16.mxu1 %v6864_v46  ;;  %7476 = vst [vmem:[#allocation10_spill] sm:$0xff] %v6991_v36 }
 0x1c8   : > { %5185 = vmatmul.mubr.msk.f32.gmra.mrb[38].mxu0 %vm554_vm0, %v6876_v53 }
 0x1c9   : > { %5350 = vmatmul.mubr.msk.f32.gmra.mrb[10].mxu1 %vm554_vm0, %v6876_v53  ;;  %5187 = vmatprep.mubr.msk.f32.mxu0 %vm554_vm0, %v6883_v6 }
 0x1ca   : > { %5352 = vmatprep.mubr.msk.f32.mxu1 %vm554_vm0, %v6883_v6 }
 0x1cc   : > { %5188 = vmatmul.mubr.msk.f32.gmra.mrb[40].mxu0 %vm554_vm0, %v6889_v54 }
 0x1cd   : > { %5353 = vmatmul.mubr.msk.f32.gmra.mrb[12].mxu1 %vm554_vm0, %v6889_v54  ;;  %5190 = vmatprep.mubr.msk.f32.mxu0 %vm554_vm0, %v6895_v61 }
 0x1ce   : > { %5355 = vmatprep.mubr.msk.f32.mxu1 %vm554_vm0, %v6895_v61 }
 0x1d0   : > { %5191 = vmatmul.mubr.msk.f32.gmra.mrb[42].mxu0 %vm554_vm0, %v6901_v12 }
 0x1d1   : > { %5356 = vmatmul.mubr.msk.f32.gmra.mrb[14].mxu1 %vm554_vm0, %v6901_v12  ;;  %5193 = vmatprep.mubr.msk.f32.mxu0 %vm554_vm0, %v6907_v0 }
 0x1d2   : > { %5358 = vmatprep.mubr.msk.f32.mxu1 %vm554_vm0, %v6907_v0 }
 0x1d4   : > { %5194 = vmatmul.mubr.msk.f32.gmra.mrb[44].mxu0 %vm554_vm0, %v6913_v2 }
 0x1d5   : > { %5359 = vmatmul.mubr.msk.f32.gmra.mrb[16].mxu1 %vm554_vm0, %v6913_v2  ;;  %5196 = vmatprep.mubr.msk.f32.mxu0 %vm554_vm0, %v6919_v9 }
 0x1d6   : > { %5361 = vmatprep.mubr.msk.f32.mxu1 %vm554_vm0, %v6919_v9 }
 0x1d8   : > { %5197 = vmatmul.mubr.msk.f32.gmra.mrb[46].mxu0 %vm554_vm0, %v6925_v13 }
 0x1d9   : > { %5362 = vmatmul.mubr.msk.f32.gmra.mrb[18].mxu1 %vm554_vm0, %v6925_v13  ;;  %5199 = vmatprep.mubr.msk.f32.mxu0 %vm554_vm0, %v6931_v15 }
 0x1da   : > { %5364 = vmatprep.mubr.msk.f32.mxu1 %vm554_vm0, %v6931_v15 }
 0x1dc   : > { %5200 = vmatmul.mubr.msk.f32.gmra.mrb[48].mxu0 %vm554_vm0, %v6937_v18 }
 0x1dd   : > { %5365 = vmatmul.mubr.msk.f32.gmra.mrb[20].mxu1 %vm554_vm0, %v6937_v18  ;;  %5202 = vmatprep.mubr.msk.f32.mxu0 %vm554_vm0, %v6943_v26 }
 0x1de   : > { %5367 = vmatprep.mubr.msk.f32.mxu1 %vm554_vm0, %v6943_v26 }
 0x1e0   : > { %5203 = vmatmul.mubr.msk.f32.gmra.mrb[50].mxu0 %vm554_vm0, %v6949_v41 }
 0x1e1   : > { %5368 = vmatmul.mubr.msk.f32.gmra.mrb[22].mxu1 %vm554_vm0, %v6949_v41  ;;  %5205 = vmatprep.mubr.msk.f32.mxu0 %vm554_vm0, %v6955_v43 }
 0x1e2   : > { %5370 = vmatprep.mubr.msk.f32.mxu1 %vm554_vm0, %v6955_v43 }
 0x1e4   : > { %5206 = vmatmul.mubr.msk.f32.gmra.mrb[52].mxu0 %vm554_vm0, %v6961_v20 }
 0x1e5   : > { %5371 = vmatmul.mubr.msk.f32.gmra.mrb[24].mxu1 %vm554_vm0, %v6961_v20  ;;  %5208 = vmatprep.mubr.msk.f32.mxu0 %vm554_vm0, %v6967_v29 }
 0x1e6   : > { %5373 = vmatprep.mubr.msk.f32.mxu1 %vm554_vm0, %v6967_v29 }
 0x1e8   : > { %5209 = vmatmul.mubr.msk.f32.gmra.mrb[54].mxu0 %vm554_vm0, %v6973_v33 }
 0x1e9   : > { %5374 = vmatmul.mubr.msk.f32.gmra.mrb[26].mxu1 %vm554_vm0, %v6973_v33  ;;  %5211 = vmatprep.mubr.msk.f32.mxu0 %vm554_vm0, %v6979_v34 }
 0x1ea   : > { %5376 = vmatprep.mubr.msk.f32.mxu1 %vm554_vm0, %v6979_v34 }
 0x1ec   : > { %5212 = vmatmul.mubr.msk.f32.gmra.mrb[56].mxu0 %vm554_vm0, %v6985_v35 }
 0x1ed   : > { %5377 = vmatmul.mubr.msk.f32.gmra.mrb[28].mxu1 %vm554_vm0, %v6985_v35  ;;  %5214 = vmatprep.mubr.msk.f32.mxu0 %vm554_vm0, %v6991_v36  ;;  %v3324_v35 = vld [vmem:[%s7459_s3 + $0xf8] sm:$0xff] }
 0x1ee   : > { %5379 = vmatprep.mubr.msk.f32.mxu1 %vm554_vm0, %v6991_v36  ;;  %v7015_v36 = vld [vmem:[#allocation2 + $0x16a] sm:$0xff] }
 0x1ef   : > { %7480 = vst [vmem:[#allocation14_spill] sm:$0xff] %v7015_v36 }
 0x1f0   : > { %5215 = vmatmul.mubr.msk.f32.gmra.mrb[58].mxu0 %vm554_vm0, %v6997_v37 }
 0x1f1   : > { %5380 = vmatmul.mubr.msk.f32.gmra.mrb[30].mxu1 %vm554_vm0, %v6997_v37  ;;  %5217 = vmatprep.mubr.msk.f32.mxu0 %vm554_vm0, %v7003_v42  ;;  %v7021_v37 = vld [vmem:[#allocation2 + $0x172] sm:$0xff] }
 0x1f2   : > { %5382 = vmatprep.mubr.msk.f32.mxu1 %vm554_vm0, %v7003_v42  ;;  %v7027_v42 = vld [vmem:[#allocation2 + $0x182] sm:$0xff] }
 0x1f4   : > { %5218 = vmatmul.mubr.msk.f32.gmra.mrb[60].mxu0 %vm554_vm0, %v7009_v16 }
 0x1f5   : > { %5383 = vmatmul.mubr.msk.f32.gmra.mrb[0].mxu1 %vm554_vm0, %v7009_v16  ;;  %5220 = vmatprep.mubr.msk.f32.mxu0 %vm554_vm0, %v7015_v36  ;;  %v7033_v16 = vld [vmem:[#allocation2 + $0x18a] sm:$0xff] }
 0x1f6   : > { %5385 = vmatprep.mubr.msk.f32.mxu1 %vm554_vm0, %v7015_v36  ;;  %7481 = vst [vmem:[#allocation15_spill] sm:$0xff] %v7033_v16  ;;  %v3323_v36 = vld [vmem:[%s7459_s3 + $0xf0] sm:$0xff] }
 0x1f8   : > { %5221 = vmatmul.mubr.msk.f32.gmra.mrb[62].mxu0 %vm554_vm0, %v7021_v37 }
 0x1f9   : > { %5386 = vmatmul.mubr.msk.f32.gmra.mrb[2].mxu1 %vm554_vm0, %v7021_v37  ;;  %5231 = vmatprep.mubr.msk.f32.mxu0 %vm554_vm0, %v6643_v17  ;;  %v5651_v17 = vpack.c.bf16 %v3324_v35, %v3323_v36  ;;  %v3319_v35 = vld [vmem:[#allocation2 + $0x199] sm:$0xff]  ;;  %v3320_v36 = vld [vmem:[#allocation2 + $0x1a1] sm:$0xff] }
 0x1fa   : > { %5388 = vmatprep.mubr.msk.f32.mxu1 %vm554_vm0, %v7027_v42 }
 0x1fc   : > { %5232 = vmatmul.mubr.msk.f32.vlgmr.msra.gmra.mrb[32].mxu0 %vm554_vm0, %v6650_v19  ;;  %v3710_v19 = vld [vmem:[%s7459_s3 + $0x100] sm:$0xff] }
 0x1fd   : > { %5389 = vmatmul.mubr.msk.f32.gmra.mrb[4].mxu1 %vm554_vm0, %v7033_v16  ;;  %5234 = vmatprep.mubr.msk.f32.mxu0 %vm554_vm0, %v6656_v22  ;;  %v3711_v16 = vld [vmem:[%s7459_s3 + $0x108] sm:$0xff] }
 0x1fe   : > { %5399 = vmatprep.mubr.msk.f32.mxu1 %vm554_vm0, %v6656_v22  ;;  %v5655_v22 = vpack.c.bf16 %v3711_v16, %v3710_v19 }
 0x200   : > { %5235 = vmatmul.mubr.msk.f32.gmra.mrb[34].mxu0 %vm554_vm0, %v6668_v23 }
 0x201   : > { %5400 = vmatmul.mubr.msk.f32.vlgmr.msra.gmra.mrb[6].mxu1 %vm554_vm0, %v6668_v23  ;;  %5237 = vmatprep.mubr.msk.f32.mxu0 %vm554_vm0, %v6676_v27  ;;  %v2930_v23 = vld [vmem:[#allocation2 + $0x198] sm:$0xff] }
 0x202   : > { %5650 = vmatpush3.bf16.msra.mxu1 %v6864_v46  ;;  %5402 = vmatprep.mubr.msk.f32.mxu1 %vm554_vm0, %v6676_v27  ;;  %v2931_v27 = vld [vmem:[#allocation2 + $0x1a0] sm:$0xff]  ;;  %v3313_v46 = vld [vmem:[#allocation2 + $0x151] sm:$0xff] }
 0x203   : > { %5652 = vmatprep.subr.bf16.mxu1 %v5651_v17 }
 0x204   : > { %5238 = vmatmul.mubr.msk.f32.gmra.mrb[36].mxu0 %vm554_vm0, %v6683_v49 }
 0x205   : > { %5403 = vmatmul.mubr.msk.f32.gmra.mrb[8].mxu1 %vm554_vm0, %v6683_v49  ;;  %5240 = vmatprep.mubr.msk.f32.mxu0 %vm554_vm0, %v6690_v51  ;;  %v3292_v49 = vld [vmem:[#allocation2 + $0x51] sm:$0xff] }
 0x206   : > { %5405 = vmatprep.mubr.msk.f32.mxu1 %vm554_vm0, %v6690_v51  ;;  %5654 = vmatpush3.bf16.msra.mxu1 %v5651_v17  ;;  %v3293_v51 = vld [vmem:[#allocation2 + $0x61] sm:$0xff] }
 0x207   : > { %5656 = vmatprep.subr.bf16.mxu1 %v5655_v22 }
 0x208   : > { %5241 = vmatmul.mubr.msk.f32.gmra.mrb[38].mxu0 %vm554_vm0, %v6696_v57 }
 0x209   : > { %5406 = vmatmul.mubr.msk.f32.gmra.mrb[10].mxu1 %vm554_vm0, %v6696_v57  ;;  %5243 = vmatprep.mubr.msk.f32.mxu0 %vm554_vm0, %v6702_v28  ;;  %v3294_v57 = vld [vmem:[#allocation2 + $0x69] sm:$0xff] }
 0x20a   : > { %5408 = vmatprep.mubr.msk.f32.mxu1 %vm554_vm0, %v6702_v28  ;;  %v3295_v28 = vld [vmem:[#allocation2 + $0x79] sm:$0xff] }
 0x20c   : > { %5244 = vmatmul.mubr.msk.f32.gmra.mrb[40].mxu0 %vm554_vm0, %v6708_v59 }
 0x20d   : > { %5409 = vmatmul.mubr.msk.f32.gmra.mrb[12].mxu1 %vm554_vm0, %v6708_v59  ;;  %5246 = vmatprep.mubr.msk.f32.mxu0 %vm554_vm0, %v6714_v1  ;;  %v3296_v59 = vld [vmem:[#allocation2 + $0x81] sm:$0xff] }
 0x20e   : > { %5411 = vmatprep.mubr.msk.f32.mxu1 %vm554_vm0, %v6714_v1  ;;  %v3297_v1 = vld [vmem:[#allocation2 + $0x91] sm:$0xff] }
 0x210   : > { %5247 = vmatmul.mubr.msk.f32.gmra.mrb[42].mxu0 %vm554_vm0, %v6720_v4 }
 0x211   : > { %5412 = vmatmul.mubr.msk.f32.gmra.mrb[14].mxu1 %vm554_vm0, %v6720_v4  ;;  %5249 = vmatprep.mubr.msk.f32.mxu0 %vm554_vm0, %v6726_v11  ;;  %v3298_v4 = vld [vmem:[#allocation2 + $0x99] sm:$0xff] }
 0x212   : > { %5414 = vmatprep.mubr.msk.f32.mxu1 %vm554_vm0, %v6726_v11  ;;  %v3299_v11 = vld [vmem:[#allocation2 + $0xa9] sm:$0xff] }
 0x214   : > { %5250 = vmatmul.mubr.msk.f32.gmra.mrb[44].mxu0 %vm554_vm0, %v6732_v14 }
 0x215   : > { %5415 = vmatmul.mubr.msk.f32.gmra.mrb[16].mxu1 %vm554_vm0, %v6732_v14  ;;  %5252 = vmatprep.mubr.msk.f32.mxu0 %vm554_vm0, %v6738_v21  ;;  %v3300_v14 = vld [vmem:[#allocation2 + $0xb1] sm:$0xff] }
 0x216   : > { %5417 = vmatprep.mubr.msk.f32.mxu1 %vm554_vm0, %v6738_v21  ;;  %v3301_v21 = vld [vmem:[#allocation2 + $0xc1] sm:$0xff] }
 0x218   : > { %5253 = vmatmul.mubr.msk.f32.gmra.mrb[46].mxu0 %vm554_vm0, %v6744_v24 }
 0x219   : > { %5418 = vmatmul.mubr.msk.f32.gmra.mrb[18].mxu1 %vm554_vm0, %v6744_v24  ;;  %5255 = vmatprep.mubr.msk.f32.mxu0 %vm554_vm0, %v6750_v30  ;;  %v3302_v24 = vld [vmem:[#allocation2 + $0xc9] sm:$0xff] }
 0x21a   : > { %5420 = vmatprep.mubr.msk.f32.mxu1 %vm554_vm0, %v6750_v30  ;;  %v3303_v30 = vld [vmem:[#allocation2 + $0xd9] sm:$0xff] }
 0x21c   : > { %5256 = vmatmul.mubr.msk.f32.gmra.mrb[48].mxu0 %vm554_vm0, %v6756_v32 }
 0x21d   : > { %5421 = vmatmul.mubr.msk.f32.gmra.mrb[20].mxu1 %vm554_vm0, %v6756_v32  ;;  %5258 = vmatprep.mubr.msk.f32.mxu0 %vm554_vm0, %v6762_v38  ;;  %v3304_v32 = vld [vmem:[#allocation2 + $0xe1] sm:$0xff] }
 0x21e   : > { %5423 = vmatprep.mubr.msk.f32.mxu1 %vm554_vm0, %v6762_v38  ;;  %v3305_v38 = vld [vmem:[#allocation2 + $0xf1] sm:$0xff] }
 0x220   : > { %5259 = vmatmul.mubr.msk.f32.gmra.mrb[50].mxu0 %vm554_vm0, %v6768_v40 }
 0x221   : > { %5424 = vmatmul.mubr.msk.f32.gmra.mrb[22].mxu1 %vm554_vm0, %v6768_v40  ;;  %5261 = vmatprep.mubr.msk.f32.mxu0 %vm554_vm0, %v6774_v48  ;;  %v3306_v40 = vld [vmem:[#allocation2 + $0xf9] sm:$0xff] }
 0x222   : > { %5426 = vmatprep.mubr.msk.f32.mxu1 %vm554_vm0, %v6774_v48  ;;  %v3307_v48 = vld [vmem:[#allocation2 + $0x109] sm:$0xff] }
 0x224   : > { %5262 = vmatmul.mubr.msk.f32.gmra.mrb[52].mxu0 %vm554_vm0, %v6780_v52 }
 0x225   : > { %5427 = vmatmul.mubr.msk.f32.gmra.mrb[24].mxu1 %vm554_vm0, %v6780_v52  ;;  %5264 = vmatprep.mubr.msk.f32.mxu0 %vm554_vm0, %v6786_v60  ;;  %v3308_v52 = vld [vmem:[#allocation2 + $0x111] sm:$0xff] }
 0x226   : > { %5429 = vmatprep.mubr.msk.f32.mxu1 %vm554_vm0, %v6786_v60  ;;  %v3309_v60 = vld [vmem:[#allocation2 + $0x121] sm:$0xff] }
 0x228   : > { %5265 = vmatmul.mubr.msk.f32.gmra.mrb[54].mxu0 %vm554_vm0, %v6792_v62 }
 0x229   : > { %5430 = vmatmul.mubr.msk.f32.gmra.mrb[26].mxu1 %vm554_vm0, %v6792_v62  ;;  %5267 = vmatprep.mubr.msk.f32.mxu0 %vm554_vm0, %v6798_v8  ;;  %v3310_v62 = vld [vmem:[#allocation2 + $0x129] sm:$0xff] }
 0x22a   : > { %5432 = vmatprep.mubr.msk.f32.mxu1 %vm554_vm0, %v6798_v8  ;;  %v3311_v8 = vld [vmem:[#allocation2 + $0x139] sm:$0xff] }
 0x22c   : > { %5268 = vmatmul.mubr.msk.f32.gmra.mrb[56].mxu0 %vm554_vm0, %v6804_v10 }
 0x22d   : > { %5433 = vmatmul.mubr.msk.f32.gmra.mrb[28].mxu1 %vm554_vm0, %v6804_v10  ;;  %v3312_v10 = vld [vmem:[#allocation2 + $0x141] sm:$0xff] }
 0x22e   : > { %5435 = vmatprep.mubr.msk.f32.mxu1 %vm554_vm0, %v6583_v44  ;;  %v3712_v44 = vld [vmem:[%s7459_s3 + $0x110] sm:$0xff] }
 0x231   : > { %5436 = vmatmul.mubr.msk.f32.gmra.mrb[30].mxu1 %vm554_vm0, %v6585_v45  ;;  %v3713_v45 = vld [vmem:[%s7459_s3 + $0x118] sm:$0xff] }
 0x232   : > { %5438 = vmatprep.mubr.msk.f32.mxu1 %vm554_vm0, %v6607_v56  ;;  %v3289_v56 = vld [vmem:[#allocation2 + $0x31] sm:$0xff] }
 0x235   : > { %5439 = vmatmul.mubr.msk.f32.gmra.mrb[0].mxu1 %vm554_vm0, %v6609_v58  ;;  %v5659_v58 = vpack.c.bf16 %v3713_v45, %v3712_v44 }
 0x236   : > { %5441 = vmatprep.mubr.msk.f32.mxu1 %vm554_vm0, %v6628_v5  ;;  %v3290_v5 = vld [vmem:[#allocation2 + $0x39] sm:$0xff] }
 0x239   : > { %5442 = vmatmul.mubr.msk.f32.gmra.mrb[2].mxu1 %vm554_vm0, %v6630_v7  ;;  %v3291_v7 = vld [vmem:[#allocation2 + $0x49] sm:$0xff] }
 0x23a   : > { %5444 = vmatprep.mubr.msk.f32.mxu1 %vm554_vm0, %v2930_v23 }
 0x23d   : > { %5445 = vmatmul.mubr.msk.f32.gmra.mrb[4].mxu1 %vm554_vm0, %v2931_v27 }
 0x23e   : > { %5455 = vmatprep.mubr.msk.f32.mxu1 %vm554_vm0, %v3289_v56 }
 0x241   : > { %5456 = vmatmul.mubr.msk.f32.vlgmr.msra.gmra.mrb[6].mxu1 %vm554_vm0, %v3290_v5 }
 0x242   : > { %5658 = vmatpush3.bf16.msra.mxu1 %v5655_v22  ;;  %5458 = vmatprep.mubr.msk.f32.mxu1 %vm554_vm0, %v3291_v7 }
 0x243   : > { %5660 = vmatprep.subr.bf16.mxu1 %v5659_v58 }
 0x245   : > { %5459 = vmatmul.mubr.msk.f32.gmra.mrb[8].mxu1 %vm554_vm0, %v3292_v49 }
 0x246   : > { %5461 = vmatprep.mubr.msk.f32.mxu1 %vm554_vm0, %v3293_v51  ;;  %5662 = vmatpush3.bf16.msra.mxu1 %v5659_v58 }
 0x249   : > { %5462 = vmatmul.mubr.msk.f32.gmra.mrb[10].mxu1 %vm554_vm0, %v3294_v57  ;;  %v7316_v57 = vld [vmem:[%s7460_s4] ss:$0 sm:$0xff] }
 0x24a   : > { %5464 = vmatprep.mubr.msk.f32.mxu1 %vm554_vm0, %v3295_v28 }
 0x24d   : > { %5465 = vmatmul.mubr.msk.f32.gmra.mrb[12].mxu1 %vm554_vm0, %v3296_v59 }
 0x24e   : > { %5467 = vmatprep.mubr.msk.f32.mxu1 %vm554_vm0, %v3297_v1 }
 0x251   : > { %5468 = vmatmul.mubr.msk.f32.gmra.mrb[14].mxu1 %vm554_vm0, %v3298_v4 }
 0x252   : > { %5470 = vmatprep.mubr.msk.f32.mxu1 %vm554_vm0, %v3299_v11 }
 0x255   : > { %5471 = vmatmul.mubr.msk.f32.gmra.mrb[16].mxu1 %vm554_vm0, %v3300_v14 }
 0x256   : > { %5473 = vmatprep.mubr.msk.f32.mxu1 %vm554_vm0, %v3301_v21 }
 0x259   : > { %5474 = vmatmul.mubr.msk.f32.gmra.mrb[18].mxu1 %vm554_vm0, %v3302_v24 }
 0x25a   : > { %5476 = vmatprep.mubr.msk.f32.mxu1 %vm554_vm0, %v3303_v30 }
 0x25d   : > { %5477 = vmatmul.mubr.msk.f32.gmra.mrb[20].mxu1 %vm554_vm0, %v3304_v32 }
 0x25e   : > { %5479 = vmatprep.mubr.msk.f32.mxu1 %vm554_vm0, %v3305_v38 }
 0x261   : > { %5480 = vmatmul.mubr.msk.f32.gmra.mrb[22].mxu1 %vm554_vm0, %v3306_v40 }
 0x262   : > { %5482 = vmatprep.mubr.msk.f32.mxu1 %vm554_vm0, %v3307_v48 }
 0x265   : > { %5483 = vmatmul.mubr.msk.f32.gmra.mrb[24].mxu1 %vm554_vm0, %v3308_v52 }
 0x266   : > { %5485 = vmatprep.mubr.msk.f32.mxu1 %vm554_vm0, %v3309_v60 }
 0x269   : > { %5486 = vmatmul.mubr.msk.f32.gmra.mrb[26].mxu1 %vm554_vm0, %v3310_v62 }
 0x26a   : > { %5488 = vmatprep.mubr.msk.f32.mxu1 %vm554_vm0, %v3311_v8 }
 0x26d   : > { %5489 = vmatmul.mubr.msk.f32.gmra.mrb[28].mxu1 %vm554_vm0, %v3312_v10 }
 0x26e   : > { %5491 = vmatprep.mubr.msk.f32.mxu1 %vm554_vm0, %v3313_v46 }
 0x271   : > { %5492 = vmatmul.mubr.msk.f32.gmra.mrb[30].mxu1 %vm554_vm0, %v6592_v47  ;;  %v7482_v47 = vld [vmem:[#allocation9_spill] sm:$0xff] }
 0x272   : > { %5494 = vmatprep.mubr.msk.f32.mxu1 %vm554_vm0, %v6605_v55  ;;  %v7483_v55 = vld [vmem:[#allocation10_spill] sm:$0xff] }
 0x275   : > { %5495 = vmatmul.mubr.msk.f32.gmra.mrb[0].mxu1 %vm554_vm0, %v6615_v63  ;;  %v7484_v63 = vld [vmem:[#allocation11_spill] sm:$0xff] }
 0x276   : > { %5497 = vmatprep.mubr.msk.f32.mxu1 %vm554_vm0, %v6826_v25  ;;  %v7485_v25 = vld [vmem:[#allocation12_spill] sm:$0xff] }
 0x279   : > { %5498 = vmatmul.mubr.msk.f32.gmra.mrb[2].mxu1 %vm554_vm0, %v6831_v31  ;;  %v7486_v31 = vld [vmem:[#allocation13_spill] sm:$0xff] }
 0x27a   : > { %5500 = vmatprep.mubr.msk.f32.mxu1 %vm554_vm0, %v3319_v35 }
 0x27d   : > { %5501 = vmatmul.mubr.msk.f32.gmra.mrb[4].mxu1 %vm554_vm0, %v3320_v36 }
 0x27e   : > { %5511 = vmatprep.mubr.msk.f32.mxu1 %vm554_vm0, %v6848_v39  ;;  %v7487_v39 = vld [vmem:[#allocation14_spill] sm:$0xff] }
 0x281   : > { %5512 = vmatmul.mubr.msk.f32.vlgmr.msra.gmra.mrb[6].mxu1 %vm554_vm0, %v6861_v3  ;;  %v3708_v3 = vld [vmem:[#allocation2 + $0x19a] sm:$0xff] }
 0x282   : > { %5514 = vmatprep.mubr.msk.f32.mxu1 %vm554_vm0, %v6870_v50  ;;  %v7488_v50 = vld [vmem:[#allocation15_spill] sm:$0xff] }
 0x285   : > { %5515 = vmatmul.mubr.msk.f32.gmra.mrb[8].mxu1 %vm554_vm0, %v6876_v53  ;;  %v3709_v53 = vld [vmem:[#allocation2 + $0x1a2] sm:$0xff] }
 0x286   : > { %5517 = vmatprep.mubr.msk.f32.mxu1 %vm554_vm0, %v6883_v6 }
 0x289   : > { %5518 = vmatmul.mubr.msk.f32.gmra.mrb[10].mxu1 %vm554_vm0, %v6889_v54 }
 0x28a   : > { %5520 = vmatprep.mubr.msk.f32.mxu1 %vm554_vm0, %v6895_v61 }
 0x28d   : > { %5521 = vmatmul.mubr.msk.f32.gmra.mrb[12].mxu1 %vm554_vm0, %v6901_v12 }
 0x28e   : > { %5523 = vmatprep.mubr.msk.f32.mxu1 %vm554_vm0, %v6907_v0 }
 0x291   : > { %5524 = vmatmul.mubr.msk.f32.gmra.mrb[14].mxu1 %vm554_vm0, %v6913_v2 }
 0x292   : > { %5526 = vmatprep.mubr.msk.f32.mxu1 %vm554_vm0, %v6919_v9 }
 0x295   : > { %5527 = vmatmul.mubr.msk.f32.gmra.mrb[16].mxu1 %vm554_vm0, %v6925_v13 }
 0x296   : > { %5529 = vmatprep.mubr.msk.f32.mxu1 %vm554_vm0, %v6931_v15 }
 0x299   : > { %5530 = vmatmul.mubr.msk.f32.gmra.mrb[18].mxu1 %vm554_vm0, %v6937_v18 }
 0x29a   : > { %5532 = vmatprep.mubr.msk.f32.mxu1 %vm554_vm0, %v6943_v26 }
 0x29d   : > { %5533 = vmatmul.mubr.msk.f32.gmra.mrb[20].mxu1 %vm554_vm0, %v6949_v41 }
 0x29e   : > { %5535 = vmatprep.mubr.msk.f32.mxu1 %vm554_vm0, %v6955_v43 }
 0x2a1   : > { %5536 = vmatmul.mubr.msk.f32.gmra.mrb[22].mxu1 %vm554_vm0, %v6961_v20 }
 0x2a2   : > { %5538 = vmatprep.mubr.msk.f32.mxu1 %vm554_vm0, %v6967_v29 }
 0x2a5   : > { %5539 = vmatmul.mubr.msk.f32.gmra.mrb[24].mxu1 %vm554_vm0, %v6973_v33 }
 0x2a6   : > { %5541 = vmatprep.mubr.msk.f32.mxu1 %vm554_vm0, %v6979_v34 }
 0x2a9   : > { %5542 = vmatmul.mubr.msk.f32.gmra.mrb[26].mxu1 %vm554_vm0, %v7482_v47 }
 0x2aa   : > { %5544 = vmatprep.mubr.msk.f32.mxu1 %vm554_vm0, %v7483_v55 }
 0x2ad   : > { %5545 = vmatmul.mubr.msk.f32.gmra.mrb[28].mxu1 %vm554_vm0, %v7484_v63 }
 0x2ae   : > { %5547 = vmatprep.mubr.msk.f32.mxu1 %vm554_vm0, %v7485_v25 }
 0x2b1   : > { %5548 = vmatmul.mubr.msk.f32.gmra.mrb[30].mxu1 %vm554_vm0, %v7486_v31 }
 0x2b2   : > { %5550 = vmatprep.mubr.msk.f32.mxu1 %vm554_vm0, %v7487_v39 }
 0x2b5   : > { %5551 = vmatmul.mubr.msk.f32.gmra.mrb[0].mxu1 %vm554_vm0, %v7021_v37 }
 0x2b6   : > { %5553 = vmatprep.mubr.msk.f32.mxu1 %vm554_vm0, %v7027_v42 }
 0x2b9   : > { %5554 = vmatmul.mubr.msk.f32.gmra.mrb[2].mxu1 %vm554_vm0, %v7488_v50 }
 0x2ba   : > { %5556 = vmatprep.mubr.msk.f32.mxu1 %vm554_vm0, %v3708_v3 }
 0x2bd   : > { %5557 = vmatmul.mubr.msk.f32.gmra.mrb[4].mxu1 %vm554_vm0, %v3709_v53 }
 0x2c3   : > { %v7267_v6 = vpop.f32.mrb[58].mxu0 }
 0x2c4   : > { %v7269_v54 = vpop.f32.mrb[59].mxu0 }
 0x2c7   : > { %v7271_v61 = vpop.f32.mrb[60].mxu0 }
 0x2c8   : > { %v7273_v12 = vpop.f32.mrb[61].mxu0 }
 0x2cb   : > { %v7275_v0 = vpop.f32.mrb[62].mxu0 }
 0x2cc   : > { %v7277_v2 = vpop.f32.mrb[63].mxu0 }
 0x2cf   : > { %v5233_v9 = vpop.f32.mrb[32].mxu0 }
 0x2d0   : > { %v1930_v13 = vpop.f32.mrb[33].mxu0 }
 0x2d3   : > { %v5236_v15 = vpop.f32.mrb[34].mxu0 }
 0x2d4   : > { %v1940_v18 = vpop.f32.mrb[35].mxu0 }
 0x2d7   : > { %v5239_v26 = vpop.f32.mrb[36].mxu0 }
 0x2d8   : > { %v1950_v41 = vpop.f32.mrb[37].mxu0 }
 0x2db   : > { %v5242_v43 = vpop.f32.mrb[38].mxu0 }
 0x2dc   : > { %v1960_v20 = vpop.f32.mrb[39].mxu0 }
 0x2df   : > { %v5245_v29 = vpop.f32.mrb[40].mxu0 }
 0x2e0   : > { %v7279_v33 = vpop.f32.mrb[41].mxu0 }
 0x2e3   : > { %v7281_v34 = vpop.f32.mrb[42].mxu0 }
 0x2e4   : > { %v7283_v37 = vpop.f32.mrb[43].mxu0 }
 0x2e7   : > { %v7285_v42 = vpop.f32.mrb[44].mxu0 }
 0x2e8   : > { %v7287_v16 = vpop.f32.mrb[45].mxu0 }
 0x2eb   : > { %v7289_v17 = vpop.f32.mrb[46].mxu0 }
 0x2ec   : > { %v7291_v19 = vpop.f32.mrb[47].mxu0 }
 0x2ef   : > { %v7293_v22 = vpop.f32.mrb[48].mxu0 }
 0x2f0   : > { %v7295_v23 = vpop.f32.mrb[49].mxu0 }
 0x2f3   : > { %v7297_v27 = vpop.f32.mrb[50].mxu0 }
 0x2f4   : > { %v7299_v44 = vpop.f32.mrb[51].mxu0 }
 0x2f7   : > { %v7301_v45 = vpop.f32.mrb[52].mxu0 }
 0x2f8   : > { %v7303_v56 = vpop.f32.mrb[53].mxu0 }
 0x2fb   : > { %v7305_v58 = vpop.f32.mrb[54].mxu0 }
 0x2fc   : > { %v7307_v5 = vpop.f32.mrb[55].mxu0 }
 0x2ff   : > { %v7309_v7 = vpop.f32.mrb[56].mxu0 }
 0x300   : > { %v7311_v49 = vpop.f32.mrb[57].mxu0 }
 0x354   : > { %v5513_v51 = vpop.f32.mrb[6].mxu1 }
 0x355   : > { %v5667_v28 = vadd.f32 %v5513_v51, %v5233_v9  ;;  %v3876_v59 = vpop.f32.mrb[7].mxu1 }
 0x356   : > { %v5668_v1 = vadd.f32 %v3876_v59, %v1930_v13 }
 0x357   : > { %v4075_v4 = vadd.f32 %v5667_v28, %v7316_v57 }
 0x358   : > { %v4074_v11 = vadd.f32 %v5668_v1, %v7316_v57  ;;  %v5516_v14 = vpop.f32.mrb[8].mxu1 }
 0x359   : > { %v4107_v21 = vmax.f32 %v4075_v4, 0.0  ;;  %v5669_v24 = vadd.f32 %v5516_v14, %v5236_v15  ;;  %v3886_v30 = vpop.f32.mrb[9].mxu1 }
 0x35a   : > { %v4106_v32 = vmax.f32 %v4074_v11, 0.0  ;;  %v5670_v38 = vadd.f32 %v3886_v30, %v1940_v18 }
 0x35b   : > { %v4140_v40 = vsel %vm4138_vm3, %v4107_v21, 0.0  ;;  %v4077_v48 = vadd.f32 %v5669_v24, %v7316_v57 }
 0x35c   : > { %v4139_v52 = vsel %vm4138_vm3, %v4106_v32, 0.0  ;;  %v4076_v60 = vadd.f32 %v5670_v38, %v7316_v57  ;;  %v5519_v62 = vpop.f32.mrb[10].mxu1 }
 0x35d   : > { %v4141_v8 = vadd.f32 %v4140_v40, %v4139_v52  ;;  %v5671_v10 = vadd.f32 %v5519_v62, %v5239_v26  ;;  %v3896_v46 = vpop.f32.mrb[11].mxu1  ;;  %v4109_v35 = vmax.f32 %v4077_v48, 0.0 }
 0x35e   : > { %v4108_v36 = vmax.f32 %v4076_v60, 0.0  ;;  %v5672_v47 = vadd.f32 %v3896_v46, %v1950_v41 }
 0x35f   : > { %v4079_v55 = vadd.f32 %v5671_v10, %v7316_v57  ;;  %v4144_v53 = vsel %vm4138_vm3, %v4109_v35, 0.0 }
 0x360   : > { %v4142_v63 = vsel %vm4138_vm3, %v4108_v36, 0.0  ;;  %v4078_v25 = vadd.f32 %v5672_v47, %v7316_v57  ;;  %v5522_v31 = vpop.f32.mrb[12].mxu1 }
 0x361   : > { %v4143_v39 = vadd.f32 %v4142_v63, %v4141_v8  ;;  %v5673_v3 = vadd.f32 %v5522_v31, %v5242_v43  ;;  %v3906_v50 = vpop.f32.mrb[13].mxu1  ;;  %v4111_v9 = vmax.f32 %v4079_v55, 0.0 }
 0x362   : > { %v4110_v13 = vmax.f32 %v4078_v25, 0.0  ;;  %v5674_v15 = vadd.f32 %v3906_v50, %v1960_v20 }
 0x363   : > { %v4145_v18 = vadd.f32 %v4144_v53, %v4143_v39  ;;  %v4081_v26 = vadd.f32 %v5673_v3, %v7316_v57  ;;  %v4148_v11 = vsel %vm4138_vm3, %v4111_v9, 0.0 }
 0x364   : > { %v4146_v41 = vsel %vm4138_vm3, %v4110_v13, 0.0  ;;  %v4080_v51 = vadd.f32 %v5674_v15, %v7316_v57  ;;  %v5525_v28 = vpop.f32.mrb[14].mxu1 }
 0x365   : > { %v4147_v59 = vadd.f32 %v4146_v41, %v4145_v18  ;;  %v5675_v1 = vadd.f32 %v5525_v28, %v5245_v29  ;;  %v3916_v4 = vpop.f32.mrb[15].mxu1  ;;  %v4113_v43 = vmax.f32 %v4081_v26, 0.0 }
 0x366   : > { %v4112_v14 = vmax.f32 %v4080_v51, 0.0  ;;  %v5676_v21 = vadd.f32 %v3916_v4, %v7279_v33 }
 0x367   : > { %v4149_v24 = vadd.f32 %v4148_v11, %v4147_v59  ;;  %v4083_v20 = vadd.f32 %v5675_v1, %v7316_v57  ;;  %v4152_v29 = vsel %vm4138_vm3, %v4113_v43, 0.0 }
 0x368   : > { %v4150_v30 = vsel %vm4138_vm3, %v4112_v14, 0.0  ;;  %v4082_v32 = vadd.f32 %v5676_v21, %v7316_v57  ;;  %v5528_v38 = vpop.f32.mrb[16].mxu1 }
 0x369   : > { %v4151_v40 = vadd.f32 %v4150_v30, %v4149_v24  ;;  %v5677_v48 = vadd.f32 %v5528_v38, %v7281_v34  ;;  %v3926_v52 = vpop.f32.mrb[17].mxu1  ;;  %v4115_v60 = vmax.f32 %v4083_v20, 0.0 }
 0x36a   : > { %v4114_v62 = vmax.f32 %v4082_v32, 0.0  ;;  %v5678_v8 = vadd.f32 %v3926_v52, %v7283_v37 }
 0x36b   : > { %v4153_v10 = vadd.f32 %v4152_v29, %v4151_v40  ;;  %v4085_v33 = vadd.f32 %v5677_v48, %v7316_v57  ;;  %v4156_v34 = vsel %vm4138_vm3, %v4115_v60, 0.0 }
 0x36c   : > { %v4154_v46 = vsel %vm4138_vm3, %v4114_v62, 0.0  ;;  %v4084_v35 = vadd.f32 %v5678_v8, %v7316_v57  ;;  %v5531_v36 = vpop.f32.mrb[18].mxu1 }
 0x36d   : > { %v4155_v47 = vadd.f32 %v4154_v46, %v4153_v10  ;;  %v5679_v55 = vadd.f32 %v5531_v36, %v7285_v42  ;;  %v3936_v63 = vpop.f32.mrb[19].mxu1  ;;  %v4117_v25 = vmax.f32 %v4085_v33, 0.0 }
 0x36e   : > { %v4116_v31 = vmax.f32 %v4084_v35, 0.0  ;;  %v5680_v39 = vadd.f32 %v3936_v63, %v7287_v16 }
 0x36f   : > { %v4157_v3 = vadd.f32 %v4156_v34, %v4155_v47  ;;  %v4087_v37 = vadd.f32 %v5679_v55, %v7316_v57  ;;  %v4160_v42 = vsel %vm4138_vm3, %v4117_v25, 0.0 }
 0x370   : > { %v4158_v50 = vsel %vm4138_vm3, %v4116_v31, 0.0  ;;  %v4086_v53 = vadd.f32 %v5680_v39, %v7316_v57  ;;  %v5534_v9 = vpop.f32.mrb[20].mxu1 }
 0x371   : > { %v4159_v13 = vadd.f32 %v4158_v50, %v4157_v3  ;;  %v5681_v15 = vadd.f32 %v5534_v9, %v7289_v17  ;;  %v3946_v18 = vpop.f32.mrb[21].mxu1  ;;  %v4119_v26 = vmax.f32 %v4087_v37, 0.0 }
 0x372   : > { %v4118_v41 = vmax.f32 %v4086_v53, 0.0  ;;  %v5682_v51 = vadd.f32 %v3946_v18, %v7291_v19 }
 0x373   : > { %v4161_v28 = vadd.f32 %v4160_v42, %v4159_v13  ;;  %v4089_v16 = vadd.f32 %v5681_v15, %v7316_v57  ;;  %v4164_v17 = vsel %vm4138_vm3, %v4119_v26, 0.0 }
 0x374   : > { %v4162_v59 = vsel %vm4138_vm3, %v4118_v41, 0.0  ;;  %v4088_v1 = vadd.f32 %v5682_v51, %v7316_v57  ;;  %v5537_v4 = vpop.f32.mrb[22].mxu1 }
 0x375   : > { %v4163_v11 = vadd.f32 %v4162_v59, %v4161_v28  ;;  %v5683_v43 = vadd.f32 %v5537_v4, %v7293_v22  ;;  %v3956_v14 = vpop.f32.mrb[23].mxu1  ;;  %v4121_v21 = vmax.f32 %v4089_v16, 0.0 }
 0x376   : > { %v4120_v24 = vmax.f32 %v4088_v1, 0.0  ;;  %v5684_v20 = vadd.f32 %v3956_v14, %v7295_v23 }
 0x377   : > { %v4165_v30 = vadd.f32 %v4164_v17, %v4163_v11  ;;  %v4091_v19 = vadd.f32 %v5683_v43, %v7316_v57  ;;  %v4168_v22 = vsel %vm4138_vm3, %v4121_v21, 0.0 }
 0x378   : > { %v4166_v32 = vsel %vm4138_vm3, %v4120_v24, 0.0  ;;  %v4090_v38 = vadd.f32 %v5684_v20, %v7316_v57  ;;  %v5540_v40 = vpop.f32.mrb[24].mxu1 }
 0x379   : > { %v4167_v48 = vadd.f32 %v4166_v32, %v4165_v30  ;;  %v5685_v52 = vadd.f32 %v5540_v40, %v7297_v27  ;;  %v3966_v29 = vpop.f32.mrb[25].mxu1  ;;  %v4123_v60 = vmax.f32 %v4091_v19, 0.0 }
 0x37a   : > { %v4122_v62 = vmax.f32 %v4090_v38, 0.0  ;;  %v5686_v8 = vadd.f32 %v3966_v29, %v7299_v44 }
 0x37b   : > { %v4169_v10 = vadd.f32 %v4168_v22, %v4167_v48  ;;  %v4093_v23 = vadd.f32 %v5685_v52, %v7316_v57  ;;  %v4172_v27 = vsel %vm4138_vm3, %v4123_v60, 0.0 }
 0x37c   : > { %v4170_v33 = vsel %vm4138_vm3, %v4122_v62, 0.0  ;;  %v4092_v46 = vadd.f32 %v5686_v8, %v7316_v57  ;;  %v5543_v35 = vpop.f32.mrb[26].mxu1 }
 0x37d   : > { %v4171_v36 = vadd.f32 %v4170_v33, %v4169_v10  ;;  %v5687_v47 = vadd.f32 %v5543_v35, %v7301_v45  ;;  %v3976_v55 = vpop.f32.mrb[27].mxu1  ;;  %v4125_v63 = vmax.f32 %v4093_v23, 0.0 }
 0x37e   : > { %v4124_v34 = vmax.f32 %v4092_v46, 0.0  ;;  %v5688_v25 = vadd.f32 %v3976_v55, %v7303_v56 }
 0x37f   : > { %v4173_v31 = vadd.f32 %v4172_v27, %v4171_v36  ;;  %v4095_v44 = vadd.f32 %v5687_v47, %v7316_v57  ;;  %v4176_v45 = vsel %vm4138_vm3, %v4125_v63, 0.0 }
 0x380   : > { %v4174_v39 = vsel %vm4138_vm3, %v4124_v34, 0.0  ;;  %v4094_v3 = vadd.f32 %v5688_v25, %v7316_v57  ;;  %v5546_v37 = vpop.f32.mrb[28].mxu1 }
 0x381   : > { %v4175_v50 = vadd.f32 %v4174_v39, %v4173_v31  ;;  %v5689_v53 = vadd.f32 %v5546_v37, %v7305_v58  ;;  %v3986_v9 = vpop.f32.mrb[29].mxu1  ;;  %v4127_v13 = vmax.f32 %v4095_v44, 0.0 }
 0x382   : > { %v4126_v15 = vmax.f32 %v4094_v3, 0.0  ;;  %v5690_v18 = vadd.f32 %v3986_v9, %v7307_v5 }
 0x383   : > { %v4177_v42 = vadd.f32 %v4176_v45, %v4175_v50  ;;  %v4097_v56 = vadd.f32 %v5689_v53, %v7316_v57  ;;  %v4180_v58 = vsel %vm4138_vm3, %v4127_v13, 0.0 }
 0x384   : > { %v4178_v26 = vsel %vm4138_vm3, %v4126_v15, 0.0  ;;  %v4096_v41 = vadd.f32 %v5690_v18, %v7316_v57  ;;  %v5549_v51 = vpop.f32.mrb[30].mxu1 }
 0x385   : > { %v4179_v28 = vadd.f32 %v4178_v26, %v4177_v42  ;;  %v5691_v16 = vadd.f32 %v5549_v51, %v7309_v7  ;;  %v3996_v59 = vpop.f32.mrb[31].mxu1  ;;  %v4129_v1 = vmax.f32 %v4097_v56, 0.0 }
 0x386   : > { %v4128_v4 = vmax.f32 %v4096_v41, 0.0  ;;  %v5692_v11 = vadd.f32 %v3996_v59, %v7311_v49 }
 0x387   : > { %v4181_v43 = vadd.f32 %v4180_v58, %v4179_v28  ;;  %v4099_v5 = vadd.f32 %v5691_v16, %v7316_v57  ;;  %v4184_v7 = vsel %vm4138_vm3, %v4129_v1, 0.0 }
 0x388   : > { %v4182_v14 = vsel %vm4138_vm3, %v4128_v4, 0.0  ;;  %v4098_v17 = vadd.f32 %v5692_v11, %v7316_v57  ;;  %v5552_v21 = vpop.f32.mrb[0].mxu1 }
 0x389   : > { %v4183_v24 = vadd.f32 %v4182_v14, %v4181_v43  ;;  %v5693_v20 = vadd.f32 %v5552_v21, %v7267_v6  ;;  %v4006_v30 = vpop.f32.mrb[1].mxu1  ;;  %v4131_v19 = vmax.f32 %v4099_v5, 0.0 }
 0x38a   : > { %v4130_v32 = vmax.f32 %v4098_v17, 0.0  ;;  %v5694_v38 = vadd.f32 %v4006_v30, %v7269_v54 }
 0x38b   : > { %v4185_v40 = vadd.f32 %v4184_v7, %v4183_v24  ;;  %v4101_v49 = vadd.f32 %v5693_v20, %v7316_v57  ;;  %v4188_v6 = vsel %vm4138_vm3, %v4131_v19, 0.0 }
 0x38c   : > { %v4186_v48 = vsel %vm4138_vm3, %v4130_v32, 0.0  ;;  %v4100_v52 = vadd.f32 %v5694_v38, %v7316_v57  ;;  %v5555_v29 = vpop.f32.mrb[2].mxu1 }
 0x38d   : > { %v4187_v22 = vadd.f32 %v4186_v48, %v4185_v40  ;;  %v5695_v60 = vadd.f32 %v5555_v29, %v7271_v61  ;;  %v4016_v62 = vpop.f32.mrb[3].mxu1  ;;  %v4133_v8 = vmax.f32 %v4101_v49, 0.0 }
 0x38e   : > { %v4132_v10 = vmax.f32 %v4100_v52, 0.0  ;;  %v5696_v23 = vadd.f32 %v4016_v62, %v7273_v12 }
 0x38f   : > { %v4189_v33 = vadd.f32 %v4188_v6, %v4187_v22  ;;  %v4103_v54 = vadd.f32 %v5695_v60, %v7316_v57  ;;  %v4192_v61 = vsel %vm4138_vm3, %v4133_v8, 0.0 }
 0x390   : > { %v4190_v46 = vsel %vm4138_vm3, %v4132_v10, 0.0  ;;  %v4102_v35 = vadd.f32 %v5696_v23, %v7316_v57  ;;  %v5558_v36 = vpop.f32.mrb[4].mxu1 }
 0x391   : > { %v4191_v47 = vadd.f32 %v4190_v46, %v4189_v33  ;;  %v5697_v55 = vadd.f32 %v5558_v36, %v7275_v0  ;;  %v4026_v27 = vpop.f32.mrb[5].mxu1  ;;  %v4135_v63 = vmax.f32 %v4103_v54, 0.0 }
 0x392   : > { %v4134_v34 = vmax.f32 %v4102_v35, 0.0  ;;  %v5698_v25 = vadd.f32 %v4026_v27, %v7277_v2 }
 0x393   : > { %v4193_v31 = vadd.f32 %v4192_v61, %v4191_v47  ;;  %v4105_v12 = vadd.f32 %v5697_v55, %v7316_v57  ;;  %v4196_v37 = vsel %vm4138_vm3, %v4135_v63, 0.0 }
 0x394   : > { %v4194_v44 = vsel %vm4138_vm3, %v4134_v34, 0.0  ;;  %v4104_v39 = vadd.f32 %v5698_v25, %v7316_v57 }
 0x395   : > { %v4195_v3 = vadd.f32 %v4194_v44, %v4193_v31  ;;  %v4137_v50 = vmax.f32 %v4105_v12, 0.0 }
 0x396   : > { %v4136_v53 = vmax.f32 %v4104_v39, 0.0 }
 0x397   : > { %v4197_v0 = vadd.f32 %v4196_v37, %v4195_v3  ;;  %v4200_v13 = vsel %vm4138_vm3, %v4137_v50, 0.0 }
 0x398   : > { %v4198_v9 = vsel %vm4138_vm3, %v4136_v53, 0.0 }
 0x399   : > { %v4199_v45 = vadd.f32 %v4198_v9, %v4197_v0 }
 0x39b   : > { %v4201_v15 = vadd.f32 %v4200_v13, %v4199_v45 }
 0x39d   : > { %v4202_v2 = vrot.slane %v4201_v15, 4 }
 0x39f   : > { %v4203_v18 = vadd.f32 %v4202_v2, %v4201_v15 }
 0x3a1   : > { %v4204_v42 = vrot.slane %v4203_v18, 2 }
 0x3a3   : > { %v4205_v56 = vadd.f32 %v4204_v42, %v4203_v18 }
 0x3a5   : > { %v4206_v26 = vrot.slane %v4205_v56, 1 }
 0x3a7   : > { %v4207_v57 = vadd.f32 %v4206_v26, %v4205_v56 }
 0x3a9   : > { %v4208_v41 = vmul.f32 0.00390625, %v4207_v57 }
 0x3ab   : > { %v4209_v51 = vsel %vm4138_vm3, %v4208_v41, -inf }
 0x3ac   : > { %4210 = vmax.xlane.f32.xlu0 %v4209_v51 }
 0x439   : > { %v4211_v28 = vpop.xlane.xlu0 %4210 }
 0x43a   : > { %v4212_v16 = vsub.f32 %v4208_v41, %v4211_v28 }
 0x43c   : > { %v4213_v59 = vmul.f32 1.442695, %v4212_v16 }
 0x43e   : > { %5972 = vpow2.f32 %v4213_v59 }
 0x448   : > { %v5973_v58 = vpop.eup %5972 }
 0x449   : > { %v4215_v1 = vsel %vm4138_vm3, %v5973_v58, 0.0 }
 0x44a   : > { %4216 = vadd.xlane.f32.xlu0 %v4215_v1 }
 0x4d7   : > { %v4217_v4 = vpop.xlane.xlu0 %4216 }
 0x4d8   : > { %5974 = vrcp.f32 %v4217_v4 }
 0x4e2   : > { %v5975_v11 = vpop.eup %5974 }
 0x4e3   : > { %v4219_v43 = vmul.f32 %v5975_v11, %v5973_v58 }
 0x4e5   : > { %4221 = vst.msk [vmem:[%s241_s9] sm:$0x1] %vm4220_vm4, %v4219_v43 }
 0x4e6   : > { %6019 = shalt.err (!%p6016_p2)
}
 0x4e7   : > { %s6020_s23 = scalar_lea.hbm %s7412_s11, 16  ;;  %s6024_s15 = scalar_lea.hbm %s7461_s5, 32 }
 0x4e8   : > { %p6021_p4 = scmp.ne.s32.totalorder %s7412_s11, %s6020_s23  ;;  %p6025_p9 = scmp.lt.u32.totalorder %s7412_s11, %s7461_s5 }
 0x4e9   : > { %p6026_p1 = scmp.lt.u32.totalorder %s6024_s15, %s6020_s23  ;;  %p6028_p6 = scmp.lt.u32.totalorder %s6020_s23, %s7412_s11 }
 0x4ea   : > { %p6022_p5 = pnand %p6021_p4, %p7489_p11 }
 0x4eb   : > { %p6027_p3 = por %p6026_p1, %p6025_p9 }
 0x4ec   : > { %p6023_p7 = pneg %p6022_p5 }
 0x4ed   : > { %p6029_p12 = por %p6028_p6, %p6027_p3 }
 0x4ef   : > { %p6030_p13 = pnand %p6029_p12, %p6023_p7 }
 0x4f1   : > { %6033 = shalt.err (!%p6030_p13)
}
 0x4f2   : > { %5925 = dma.vmem_to_hbm [thread:$0]  (%p7489_p11), %s7414_s10, 16, %s7412_s11, %s4223_s13  }
 0x4f3 PF: > { %s4247_s7 = sand.u32 1, %s6060_s18   ;;  %p7490_p8 = scmp.ne.s32.totalorder %s7473_s6, 0 }
 0x4f4   : > { %p7491_p10 = scmp.ge.s32.totalorder %s6072_s21, 2  ;;  %s4248_s9 = scalar_lea.sflag [#allocation5], %s4247_s7 }
 0x4f6   : > { %p5932_p0 = pnand %p7491_p10, %p7490_p8 }
 0x4f8   : > { %6055 = dma.done.wait (!%p5932_p0), %s4248_s9, 16  }
 0x4f9   : > { %6057 = vsyncadd (!%p5932_p0), %s4248_s9, 4294967280  ;;  %p18_p2 = scmp.ge.s32.totalorder %s6134_s24, 4   ;;  %s7492_s18 = smov %s6064_s19 }
 0x4fa   : > { %s7493_s19 = smov %s6068_s20  ;;  %s7494_s20 = smov %s6146_s27 }
 0x4fb   : > { %s7495_s21 = smov %s6134_s24  ;;  %20 = sbr.rel (!%p18_p2) target bundleno = 5 (0x5), region = 88 }
 0x502   :  { %4252 = vsyncpa [#allocation4], 1 }
 0x503   :  { %4254 = vsyncpa [#allocation4 + $0x1], 1 }
 0x504   :  { %4255 = vsyncpa [#allocation5], 1 }
 0x505   :  { %4257 = vsyncpa [#allocation5 + $0x1], 1 }

</bundles_post_ra>
